<compile_context>
chip_gen: v7x
topology: tpu7x:2x2x1
jax: 0.10.0
libtpu: 0.0.40
codegen_flags: <defaults>
</compile_context>

<pallas_src>
import functools

import jax
import jax.numpy as jnp
from jax import lax
from jax.experimental import pallas as pl
from jax.experimental.pallas import tpu as pltpu


def _point_similarity_kernel(vpti_ref, vptf_ref, ep_ref,
                             w1_ref, c1_ref, w2_ref, c2_ref, w3_ref, b3_ref,
                             ep_out_ref, nsim_out_ref,
                             logits_sc, nsim_sc,
                             *, distance_metric):
    N = ep_ref.shape[2]
    TI = ep_ref.shape[1]
    t = pl.program_id(1)

    vpti = vpti_ref[0, 0]          # (D, TI)  this tile's i-rows, transposed
    w1t = w1_ref[...]              # (H1, D)  BN-folded conv1 weight, transposed
    c1 = c1_ref[...]               # (H1, 1)
    w2t = w2_ref[...]              # (H2, H1) BN-folded conv2 weight, transposed
    c2 = c2_ref[...]               # (H2, 1)
    w3 = w3_ref[...]               # (1, H2)
    b3 = b3_ref[0, 0]              # scalar (SMEM)

    # --- conv stack: channels on sublanes, j-pixels on lanes ---------------
    # Static unroll over the TI i-rows of this tile; every activation is a
    # lane-dense (C, N) slab, every channel contraction is a 2-D MXU matmul.
    for i in range(TI):
        col = vpti[:, i:i + 1]                       # (D, 1)  vp_i as a column
        # Re-read vp^T from its VMEM block each iteration so a large value is
        # never pinned across the unrolled loop.
        diff = vptf_ref[0] - col                     # (D, N)
        if distance_metric == "l2":
            sim = diff * diff
        else:                                        # "l1"
            sim = jnp.abs(diff)
        # node similarity row i: exact f32 reduce over the D sublanes.
        nsim_sc[pl.ds(i, 1), :] = -jnp.sum(sim, axis=0, keepdims=True)

        h = jnp.dot(w1t, sim, preferred_element_type=jnp.float32) + c1   # (H1, N)
        h = jnp.where(h > 0, h, 0.01 * h)                                # LeakyReLU
        h = jnp.dot(w2t, h, preferred_element_type=jnp.float32) + c2     # (H2, N)
        h = jnp.where(h > 0, h, 0.01 * h)
        # Final 1-channel conv on the MXU, result already j-on-lanes.
        logits_sc[pl.ds(i, 1), :] = (
            jnp.dot(w3, h, preferred_element_type=jnp.float32) + b3)     # (1, N)

    nsim_out_ref[0] = nsim_sc[...]                   # one lane-dense block store

    # sigmoid(x) == 0.5*tanh(0.5*x) + 0.5 : single EUP push per logit.
    ep_raw = 0.5 * jnp.tanh(0.5 * logits_sc[...]) + 0.5                  # (TI, N)

    # --- epilogue (batched over the tile) -----------------------------------
    gi = lax.broadcasted_iota(jnp.int32, (TI, N), 0) + t * TI
    gj = lax.broadcasted_iota(jnp.int32, (TI, N), 1)
    is_diag = gi == gj                                # bool diagonal mask (no float eye)

    ep = ep_ref[0]                                    # (TI, N)
    ep_m = jnp.where(is_diag, 0.0, ep)                # ep_last_gen *= (1 - I)
    ep_sum = jnp.sum(ep_m, axis=-1, keepdims=True)    # row sums
    prod = ep_raw * ep_m
    l1n = jnp.sum(jnp.abs(prod), axis=-1, keepdims=True)
    # Exact reciprocals: approx=True would risk the 1e-4 validation (review's
    # correctness note) and the epilogue is not the bottleneck any more.
    inv_l1 = pl.reciprocal(jnp.maximum(l1n, 1e-12), approx=False)
    out = prod * (inv_l1 * ep_sum)                    # F.normalize(p=1) * sum
    out = jnp.where(is_diag, out + 1.0, out) + 1e-6   # += I + 1e-6
    inv_row = pl.reciprocal(jnp.sum(out, axis=-1, keepdims=True), approx=False)
    ep_out_ref[0] = out * inv_row                     # row re-normalization


def _vmem_budget_bytes():
    """Scoped-VMEM limit per generation (v5e/v6e 128 MiB -> 64 MiB, v7x -> 32 MiB)."""
    cap = None
    try:
        cap = getattr(pltpu.get_tpu_info(), "vmem_capacity_bytes", None)
    except Exception:
        cap = None
    if not cap:
        cap = 64 << 20            # conservative (v7x-sized) fallback
    return min(cap // 2, 64 << 20)


def _tile_vmem_bytes(ti, N, D, H1, H2):
    """Per-step VMEM estimate incl. double-buffered I/O blocks, scratch, temps."""
    io = 2 * (D * ti + D * N + ti * N)                 # inputs: vp^T i-tile, vp^T, ep
    io += 2 * 2 * ti * N                               # outputs: ep_ij, nsim
    io += 2 * (H1 * D + H1 + H2 * H1 + H2 + H2)        # weights
    scratch = 2 * ti * N                               # logits + nsim scratch
    live = (2 * D + H1 + H2 + 4) * N + 10 * ti * N     # conv temps + epilogue
    return 4 * (io + scratch + live)


def _pick_row_tile(N, D, H1, H2, budget_bytes, unroll_cap=32):
    """Largest row tile that satisfies the (8,·) block rule, fits the VMEM
    budget and keeps the static unroll reasonable."""
    if N % 8 != 0 or N <= unroll_cap:
        # TODO(synk): pad N to a lane-friendly multiple (and mask the tail) for
        # large graphs whose size is not a multiple of 8.
        return N
    best = 8
    for ti in range(8, min(N, unroll_cap) + 1, 8):
        if N % ti == 0 and _tile_vmem_bytes(ti, N, D, H1, H2) <= budget_bytes:
            best = ti
    return best


def point_similarity(vp, ep, params, distance_metric="l2", row_tile=None):
    if distance_metric not in ("l2", "l1"):
        raise ValueError(distance_metric)
    B, N, D = vp.shape
    w1, s1, c1, w2, s2, c2, w3, b3 = params
    H1, H2 = w1.shape[1], w2.shape[1]

    vmem_limit = _vmem_budget_bytes()
    TI = row_tile or _pick_row_tile(N, D, H1, H2, (vmem_limit * 3) // 4)
    assert N % TI == 0 and (TI % 8 == 0 or TI == N), (N, TI)
    NT = N // TI

    # Eval-mode BatchNorm scales folded into the conv weights; weights are
    # pre-transposed for the channels-on-sublanes layout.
    w1t = (w1 * s1).T.astype(jnp.float32)            # (H1, D)
    c1t = c1.reshape(H1, 1).astype(jnp.float32)      # (H1, 1)
    w2t = (w2 * s2).T.astype(jnp.float32)            # (H2, H1)
    c2t = c2.reshape(H2, 1).astype(jnp.float32)      # (H2, 1)
    w3f = w3.astype(jnp.float32)                     # (1, H2)
    b3f = b3.astype(jnp.float32)                     # (1, 1) -> SMEM scalar

    vp = vp.astype(jnp.float32)
    ep = ep.astype(jnp.float32)
    vpT = jnp.swapaxes(vp, 1, 2)                              # (B, D, N)
    vpTi = jnp.swapaxes(vp.reshape(B, NT, TI, D), 2, 3)       # (B, NT, D, TI)

    kernel = functools.partial(_point_similarity_kernel,
                               distance_metric=distance_metric)

    def wmap(b, t):                                  # replicated weight blocks
        return (0, 0)

    grid_spec = pltpu.PrefetchScalarGridSpec(
        num_scalar_prefetch=0,
        grid=(B, NT),
        in_specs=[
            pl.BlockSpec((1, 1, D, TI), lambda b, t: (b, t, 0, 0)),  # vp^T i-tile
            pl.BlockSpec((1, D, N), lambda b, t: (b, 0, 0)),         # vp^T (all j)
            pl.BlockSpec((1, TI, N), lambda b, t: (b, t, 0)),        # ep rows
            pl.BlockSpec((H1, D), wmap), pl.BlockSpec((H1, 1), wmap),    # conv1
            pl.BlockSpec((H2, H1), wmap), pl.BlockSpec((H2, 1), wmap),   # conv2
            pl.BlockSpec((1, H2), wmap),                                 # conv3 w
            pl.BlockSpec(memory_space=pltpu.MemorySpace.SMEM),           # conv3 b
        ],
        out_specs=[pl.BlockSpec((1, TI, N), lambda b, t: (b, t, 0)),
                   pl.BlockSpec((1, TI, N), lambda b, t: (b, t, 0))],
        scratch_shapes=[pltpu.VMEM((TI, N), jnp.float32),     # logits rows
                        pltpu.VMEM((TI, N), jnp.float32)],    # nsim rows
    )

    return pl.pallas_call(
        kernel,
        out_shape=(jax.ShapeDtypeStruct((B, N, N), jnp.float32),
                   jax.ShapeDtypeStruct((B, N, N), jnp.float32)),
        grid_spec=grid_spec,
        compiler_params=pltpu.CompilerParams(
            # TODO(synk): evaluate pltpu.CORE_PARALLEL on the tile axis for
            # v7x at B=1-2; "parallel" already permits megacore sharding.
            dimension_semantics=("parallel", "parallel"),
            vmem_limit_bytes=vmem_limit,
        ),
    )(vpTi, vpT, ep, w1t, c1t, w2t, c2t, w3f, b3f)


def init_params(key, in_c, base_c):
    """Deterministic synthetic weights; BatchNorm kept as (scale, bias) pairs."""
    h1, h2 = base_c * 2, base_c
    ks = jax.random.split(key, 12)

    def bn_fold(kg, kb, km, kv, c):
        gamma = 1.0 + 0.1 * jax.random.normal(kg, (c,), jnp.float32)
        beta = 0.1 * jax.random.normal(kb, (c,), jnp.float32)
        mean = 0.1 * jax.random.normal(km, (c,), jnp.float32)
        var = 1.0 + 0.1 * jax.random.uniform(kv, (c,), jnp.float32)
        scale = gamma / jnp.sqrt(var + 1e-5)
        bias = beta - mean * scale
        return scale.reshape(1, c), bias.reshape(1, c)

    w1 = jax.random.normal(ks[0], (in_c, h1), jnp.float32) / jnp.sqrt(in_c)
    s1, c1 = bn_fold(ks[1], ks[2], ks[3], ks[4], h1)
    w2 = jax.random.normal(ks[5], (h1, h2), jnp.float32) / jnp.sqrt(h1)
    s2, c2 = bn_fold(ks[6], ks[7], ks[8], ks[9], h2)
    w3 = jax.random.normal(ks[10], (1, h2), jnp.float32) / jnp.sqrt(h2)
    b3 = 0.1 * jax.random.normal(ks[11], (1, 1), jnp.float32)
    return (w1, s1, c1, w2, s2, c2, w3, b3)


def reference(vp, ep, params, distance_metric="l2"):
    """Pure-JAX reference mirroring the PyTorch forward (eval-mode BN)."""
    w1, s1, c1, w2, s2, c2, w3, b3 = params
    B, N, D = vp.shape
    diff = vp[:, :, None, :] - vp[:, None, :, :]
    sim = diff * diff if distance_metric == "l2" else jnp.abs(diff)
    nsim = -jnp.sum(sim, axis=-1)
    x = sim.reshape(B, N * N, D)
    h = x @ w1 * s1 + c1
    h = jnp.where(h > 0, h, 0.01 * h)
    h = h @ w2 * s2 + c2
    h = jnp.where(h > 0, h, 0.01 * h)
    logits = (h @ w3.T + b3[0, 0]).reshape(B, N, N)
    ep_raw = jax.nn.sigmoid(logits)
    eye = jnp.eye(N, dtype=jnp.float32)[None]
    ep_m = ep * (1.0 - eye)
    ep_sum = jnp.sum(ep_m, -1, keepdims=True)
    prod = ep_raw * ep_m
    l1 = jnp.sum(jnp.abs(prod), -1, keepdims=True)
    out = prod / jnp.maximum(l1, 1e-12) * ep_sum
    out = out + eye + 1e-6
    out = out / jnp.sum(out, -1, keepdims=True)
    return out, nsim


if __name__ == "__main__":
    B, N, in_c, base_c = 2, 8, 16, 8
    key = jax.random.PRNGKey(0)
    k_vp, k_ep, k_par = jax.random.split(key, 3)
    vp = jax.random.normal(k_vp, (B, N, in_c), jnp.float32)
    ep = jax.random.uniform(k_ep, (B, N, N), jnp.float32)
    params = init_params(k_par, in_c, base_c)

    for metric in ("l2", "l1"):
        ep_ij, nsim = point_similarity(vp, ep, params, distance_metric=metric)
        jax.block_until_ready((ep_ij, nsim))
        ref_ep, ref_nsim = reference(vp, ep, params, distance_metric=metric)
        assert jnp.allclose(ep_ij, ref_ep, atol=1e-4, rtol=1e-4), metric
        assert jnp.allclose(nsim, ref_nsim, atol=1e-4, rtol=1e-4), metric

    print("KERNEL_OK")
</pallas_src>

<mosaic_0001>
module attributes {stable_mosaic.version = 11 : i64} {
  func.func @_point_similarity_kernel(%arg0: i32, %arg1: i32, %arg2: memref<1x1x16x8xf32, #tpu.memory_space<vmem>>, %arg3: memref<1x16x8xf32, #tpu.memory_space<vmem>>, %arg4: memref<1x8x8xf32, #tpu.memory_space<vmem>>, %arg5: memref<16x16xf32, #tpu.memory_space<vmem>>, %arg6: memref<16x1xf32, #tpu.memory_space<vmem>>, %arg7: memref<8x16xf32, #tpu.memory_space<vmem>>, %arg8: memref<8x1xf32, #tpu.memory_space<vmem>>, %arg9: memref<1x8xf32, #tpu.memory_space<vmem>>, %arg10: memref<1x1xf32, #tpu.memory_space<smem>>, %arg11: memref<1x8x8xf32, #tpu.memory_space<vmem>>, %arg12: memref<1x8x8xf32, #tpu.memory_space<vmem>>, %arg13: memref<8x8xf32, #tpu.memory_space<vmem>>, %arg14: memref<8x8xf32, #tpu.memory_space<vmem>>) attributes {dimension_semantics = [#tpu.dimension_semantics<parallel>, #tpu.dimension_semantics<parallel>], iteration_bounds = array<i64: 2, 1>, scalar_prefetch = 0 : i64, scratch_operands = 2 : i64, tpu.core_type = #tpu.core_type<tc>, window_params = [{transform_indices = @transform_0, window_bounds = array<i64: 1, 1, 16, 8>}, {transform_indices = @transform_1, window_bounds = array<i64: 1, 16, 8>}, {transform_indices = @transform_2, window_bounds = array<i64: 1, 8, 8>}, {pipeline_mode = #tpu.pipeline_mode<synchronous>, transform_indices = @transform_3, window_bounds = array<i64: 16, 16>}, {pipeline_mode = #tpu.pipeline_mode<synchronous>, transform_indices = @transform_4, window_bounds = array<i64: 16, 1>}, {pipeline_mode = #tpu.pipeline_mode<synchronous>, transform_indices = @transform_5, window_bounds = array<i64: 8, 16>}, {pipeline_mode = #tpu.pipeline_mode<synchronous>, transform_indices = @transform_6, window_bounds = array<i64: 8, 1>}, {pipeline_mode = #tpu.pipeline_mode<synchronous>, transform_indices = @transform_7, window_bounds = array<i64: 1, 8>}, {transform_indices = @transform_8, window_bounds = array<i64: 1, 1>}, {transform_indices = @transform_9, window_bounds = array<i64: 1, 8, 8>}, {transform_indices = @transform_10, window_bounds = array<i64: 1, 8, 8>}]} {
    %c0 = arith.constant 0 : index
    %c0_0 = arith.constant 0 : index
    %c0_1 = arith.constant 0 : index
    %c0_2 = arith.constant 0 : index
    %0 = vector.load %arg2[%c0, %c0_0, %c0_1, %c0_2] : memref<1x1x16x8xf32, #tpu.memory_space<vmem>>, vector<1x1x16x8xf32>
    %1 = vector.shape_cast %0 : vector<1x1x16x8xf32> to vector<16x8xf32>
    %c0_3 = arith.constant 0 : index
    %c0_4 = arith.constant 0 : index
    %2 = vector.load %arg5[%c0_3, %c0_4] : memref<16x16xf32, #tpu.memory_space<vmem>>, vector<16x16xf32>
    %c0_5 = arith.constant 0 : index
    %c0_6 = arith.constant 0 : index
    %3 = vector.load %arg6[%c0_5, %c0_6] : memref<16x1xf32, #tpu.memory_space<vmem>>, vector<16x1xf32>
    %c0_7 = arith.constant 0 : index
    %c0_8 = arith.constant 0 : index
    %4 = vector.load %arg7[%c0_7, %c0_8] : memref<8x16xf32, #tpu.memory_space<vmem>>, vector<8x16xf32>
    %c0_9 = arith.constant 0 : index
    %c0_10 = arith.constant 0 : index
    %5 = vector.load %arg8[%c0_9, %c0_10] : memref<8x1xf32, #tpu.memory_space<vmem>>, vector<8x1xf32>
    %c0_11 = arith.constant 0 : index
    %c0_12 = arith.constant 0 : index
    %6 = vector.load %arg9[%c0_11, %c0_12] : memref<1x8xf32, #tpu.memory_space<vmem>>, vector<1x8xf32>
    %c0_13 = arith.constant 0 : index
    %c0_14 = arith.constant 0 : index
    %7 = memref.load %arg10[%c0_13, %c0_14] : memref<1x1xf32, #tpu.memory_space<smem>>
    %8 = vector.extract_strided_slice %1 {offsets = [0, 0], sizes = [16, 1], strides = [1, 1]} : vector<16x8xf32> to vector<16x1xf32>
    %c0_15 = arith.constant 0 : index
    %c0_16 = arith.constant 0 : index
    %c0_17 = arith.constant 0 : index
    %9 = vector.load %arg3[%c0_15, %c0_16, %c0_17] : memref<1x16x8xf32, #tpu.memory_space<vmem>>, vector<1x16x8xf32>
    %10 = vector.shape_cast %9 : vector<1x16x8xf32> to vector<16x8xf32>
    %11 = vector.broadcast %8 : vector<16x1xf32> to vector<16x8xf32>
    %12 = arith.subf %10, %11 : vector<16x8xf32>
    %13 = arith.mulf %12, %12 : vector<16x8xf32>
    %cst = arith.constant dense<0.000000e+00> : vector<8xf32>
    %14 = vector.multi_reduction <add>, %13, %cst [0] : vector<16x8xf32> to vector<8xf32>
    %15 = vector.shape_cast %14 : vector<8xf32> to vector<1x8xf32>
    %cst_18 = arith.constant 0.000000e+00 : f32
    %16 = vector.broadcast %cst_18 : f32 to vector<1x8xf32>
    %17 = arith.subf %16, %15 : vector<1x8xf32>
    %c0_19 = arith.constant 0 : index
    %c0_20 = arith.constant 0 : index
    %18 = vector.load %arg14[%c0_19, %c0_20] : memref<8x8xf32, #tpu.memory_space<vmem>>, vector<1x8xf32>
    tpu.vector_store %arg14[%c0_19, %c0_20], %17 {strides = array<i32>} : memref<8x8xf32, #tpu.memory_space<vmem>>, vector<1x8xf32>,
    %cst_21 = arith.constant dense<0.000000e+00> : vector<16x8xf32>
    %19 = tpu.matmul %2, %13, %cst_21 {dimension_numbers = #tpu.dot_dimension_numbers<[1], [0], [0], [1], [0, 0, 1, 1], [], []>} : vector<16x16xf32>, vector<16x8xf32>, vector<16x8xf32> -> vector<16x8xf32>
    %20 = vector.broadcast %3 : vector<16x1xf32> to vector<16x8xf32>
    %21 = arith.addf %19, %20 : vector<16x8xf32>
    %cst_22 = arith.constant 0.000000e+00 : f32
    %22 = vector.broadcast %cst_22 : f32 to vector<16x8xf32>
    %23 = arith.cmpf ogt, %21, %22 : vector<16x8xf32>
    %cst_23 = arith.constant 0.00999999977 : f32
    %24 = vector.broadcast %cst_23 : f32 to vector<16x8xf32>
    %25 = arith.mulf %24, %21 : vector<16x8xf32>
    %26 = arith.select %23, %21, %25 : vector<16x8xi1>, vector<16x8xf32>
    %cst_24 = arith.constant dense<0.000000e+00> : vector<8x8xf32>
    %27 = tpu.matmul %4, %26, %cst_24 {dimension_numbers = #tpu.dot_dimension_numbers<[1], [0], [0], [1], [0, 0, 1, 1], [], []>} : vector<8x16xf32>, vector<16x8xf32>, vector<8x8xf32> -> vector<8x8xf32>
    %28 = vector.broadcast %5 : vector<8x1xf32> to vector<8x8xf32>
    %29 = arith.addf %27, %28 : vector<8x8xf32>
    %cst_25 = arith.constant 0.000000e+00 : f32
    %30 = vector.broadcast %cst_25 : f32 to vector<8x8xf32>
    %31 = arith.cmpf ogt, %29, %30 : vector<8x8xf32>
    %cst_26 = arith.constant 0.00999999977 : f32
    %32 = vector.broadcast %cst_26 : f32 to vector<8x8xf32>
    %33 = arith.mulf %32, %29 : vector<8x8xf32>
    %34 = arith.select %31, %29, %33 : vector<8x8xi1>, vector<8x8xf32>
    %cst_27 = arith.constant dense<0.000000e+00> : vector<1x8xf32>
    %35 = tpu.matmul %6, %34, %cst_27 {dimension_numbers = #tpu.dot_dimension_numbers<[1], [0], [0], [1], [0, 0, 1, 1], [], []>} : vector<1x8xf32>, vector<8x8xf32>, vector<1x8xf32> -> vector<1x8xf32>
    %36 = vector.broadcast %7 : f32 to vector<1x8xf32>
    %37 = arith.addf %35, %36 : vector<1x8xf32>
    %c0_28 = arith.constant 0 : index
    %c0_29 = arith.constant 0 : index
    %38 = vector.load %arg13[%c0_28, %c0_29] : memref<8x8xf32, #tpu.memory_space<vmem>>, vector<1x8xf32>
    tpu.vector_store %arg13[%c0_28, %c0_29], %37 {strides = array<i32>} : memref<8x8xf32, #tpu.memory_space<vmem>>, vector<1x8xf32>,
    %39 = vector.extract_strided_slice %1 {offsets = [0, 1], sizes = [16, 1], strides = [1, 1]} : vector<16x8xf32> to vector<16x1xf32>
    %c0_30 = arith.constant 0 : index
    %c0_31 = arith.constant 0 : index
    %c0_32 = arith.constant 0 : index
    %40 = vector.load %arg3[%c0_30, %c0_31, %c0_32] : memref<1x16x8xf32, #tpu.memory_space<vmem>>, vector<1x16x8xf32>
    %41 = vector.shape_cast %40 : vector<1x16x8xf32> to vector<16x8xf32>
    %42 = vector.broadcast %39 : vector<16x1xf32> to vector<16x8xf32>
    %43 = arith.subf %41, %42 : vector<16x8xf32>
    %44 = arith.mulf %43, %43 : vector<16x8xf32>
    %cst_33 = arith.constant dense<0.000000e+00> : vector<8xf32>
    %45 = vector.multi_reduction <add>, %44, %cst_33 [0] : vector<16x8xf32> to vector<8xf32>
    %46 = vector.shape_cast %45 : vector<8xf32> to vector<1x8xf32>
    %cst_34 = arith.constant 0.000000e+00 : f32
    %47 = vector.broadcast %cst_34 : f32 to vector<1x8xf32>
    %48 = arith.subf %47, %46 : vector<1x8xf32>
    %c1 = arith.constant 1 : index
    %c0_35 = arith.constant 0 : index
    %49 = vector.load %arg14[%c1, %c0_35] : memref<8x8xf32, #tpu.memory_space<vmem>>, vector<1x8xf32>
    tpu.vector_store %arg14[%c1, %c0_35], %48 {strides = array<i32>} : memref<8x8xf32, #tpu.memory_space<vmem>>, vector<1x8xf32>,
    %cst_36 = arith.constant dense<0.000000e+00> : vector<16x8xf32>
    %50 = tpu.matmul %2, %44, %cst_36 {dimension_numbers = #tpu.dot_dimension_numbers<[1], [0], [0], [1], [0, 0, 1, 1], [], []>} : vector<16x16xf32>, vector<16x8xf32>, vector<16x8xf32> -> vector<16x8xf32>
    %51 = vector.broadcast %3 : vector<16x1xf32> to vector<16x8xf32>
    %52 = arith.addf %50, %51 : vector<16x8xf32>
    %cst_37 = arith.constant 0.000000e+00 : f32
    %53 = vector.broadcast %cst_37 : f32 to vector<16x8xf32>
    %54 = arith.cmpf ogt, %52, %53 : vector<16x8xf32>
    %cst_38 = arith.constant 0.00999999977 : f32
    %55 = vector.broadcast %cst_38 : f32 to vector<16x8xf32>
    %56 = arith.mulf %55, %52 : vector<16x8xf32>
    %57 = arith.select %54, %52, %56 : vector<16x8xi1>, vector<16x8xf32>
    %cst_39 = arith.constant dense<0.000000e+00> : vector<8x8xf32>
    %58 = tpu.matmul %4, %57, %cst_39 {dimension_numbers = #tpu.dot_dimension_numbers<[1], [0], [0], [1], [0, 0, 1, 1], [], []>} : vector<8x16xf32>, vector<16x8xf32>, vector<8x8xf32> -> vector<8x8xf32>
    %59 = vector.broadcast %5 : vector<8x1xf32> to vector<8x8xf32>
    %60 = arith.addf %58, %59 : vector<8x8xf32>
    %cst_40 = arith.constant 0.000000e+00 : f32
    %61 = vector.broadcast %cst_40 : f32 to vector<8x8xf32>
    %62 = arith.cmpf ogt, %60, %61 : vector<8x8xf32>
    %cst_41 = arith.constant 0.00999999977 : f32
    %63 = vector.broadcast %cst_41 : f32 to vector<8x8xf32>
    %64 = arith.mulf %63, %60 : vector<8x8xf32>
    %65 = arith.select %62, %60, %64 : vector<8x8xi1>, vector<8x8xf32>
    %cst_42 = arith.constant dense<0.000000e+00> : vector<1x8xf32>
    %66 = tpu.matmul %6, %65, %cst_42 {dimension_numbers = #tpu.dot_dimension_numbers<[1], [0], [0], [1], [0, 0, 1, 1], [], []>} : vector<1x8xf32>, vector<8x8xf32>, vector<1x8xf32> -> vector<1x8xf32>
    %67 = vector.broadcast %7 : f32 to vector<1x8xf32>
    %68 = arith.addf %66, %67 : vector<1x8xf32>
    %c1_43 = arith.constant 1 : index
    %c0_44 = arith.constant 0 : index
    %69 = vector.load %arg13[%c1_43, %c0_44] : memref<8x8xf32, #tpu.memory_space<vmem>>, vector<1x8xf32>
    tpu.vector_store %arg13[%c1_43, %c0_44], %68 {strides = array<i32>} : memref<8x8xf32, #tpu.memory_space<vmem>>, vector<1x8xf32>,
    %70 = vector.extract_strided_slice %1 {offsets = [0, 2], sizes = [16, 1], strides = [1, 1]} : vector<16x8xf32> to vector<16x1xf32>
    %c0_45 = arith.constant 0 : index
    %c0_46 = arith.constant 0 : index
    %c0_47 = arith.constant 0 : index
    %71 = vector.load %arg3[%c0_45, %c0_46, %c0_47] : memref<1x16x8xf32, #tpu.memory_space<vmem>>, vector<1x16x8xf32>
    %72 = vector.shape_cast %71 : vector<1x16x8xf32> to vector<16x8xf32>
    %73 = vector.broadcast %70 : vector<16x1xf32> to vector<16x8xf32>
    %74 = arith.subf %72, %73 : vector<16x8xf32>
    %75 = arith.mulf %74, %74 : vector<16x8xf32>
    %cst_48 = arith.constant dense<0.000000e+00> : vector<8xf32>
    %76 = vector.multi_reduction <add>, %75, %cst_48 [0] : vector<16x8xf32> to vector<8xf32>
    %77 = vector.shape_cast %76 : vector<8xf32> to vector<1x8xf32>
    %cst_49 = arith.constant 0.000000e+00 : f32
    %78 = vector.broadcast %cst_49 : f32 to vector<1x8xf32>
    %79 = arith.subf %78, %77 : vector<1x8xf32>
    %c2 = arith.constant 2 : index
    %c0_50 = arith.constant 0 : index
    %80 = vector.load %arg14[%c2, %c0_50] : memref<8x8xf32, #tpu.memory_space<vmem>>, vector<1x8xf32>
    tpu.vector_store %arg14[%c2, %c0_50], %79 {strides = array<i32>} : memref<8x8xf32, #tpu.memory_space<vmem>>, vector<1x8xf32>,
    %cst_51 = arith.constant dense<0.000000e+00> : vector<16x8xf32>
    %81 = tpu.matmul %2, %75, %cst_51 {dimension_numbers = #tpu.dot_dimension_numbers<[1], [0], [0], [1], [0, 0, 1, 1], [], []>} : vector<16x16xf32>, vector<16x8xf32>, vector<16x8xf32> -> vector<16x8xf32>
    %82 = vector.broadcast %3 : vector<16x1xf32> to vector<16x8xf32>
    %83 = arith.addf %81, %82 : vector<16x8xf32>
    %cst_52 = arith.constant 0.000000e+00 : f32
    %84 = vector.broadcast %cst_52 : f32 to vector<16x8xf32>
    %85 = arith.cmpf ogt, %83, %84 : vector<16x8xf32>
    %cst_53 = arith.constant 0.00999999977 : f32
    %86 = vector.broadcast %cst_53 : f32 to vector<16x8xf32>
    %87 = arith.mulf %86, %83 : vector<16x8xf32>
    %88 = arith.select %85, %83, %87 : vector<16x8xi1>, vector<16x8xf32>
    %cst_54 = arith.constant dense<0.000000e+00> : vector<8x8xf32>
    %89 = tpu.matmul %4, %88, %cst_54 {dimension_numbers = #tpu.dot_dimension_numbers<[1], [0], [0], [1], [0, 0, 1, 1], [], []>} : vector<8x16xf32>, vector<16x8xf32>, vector<8x8xf32> -> vector<8x8xf32>
    %90 = vector.broadcast %5 : vector<8x1xf32> to vector<8x8xf32>
    %91 = arith.addf %89, %90 : vector<8x8xf32>
    %cst_55 = arith.constant 0.000000e+00 : f32
    %92 = vector.broadcast %cst_55 : f32 to vector<8x8xf32>
    %93 = arith.cmpf ogt, %91, %92 : vector<8x8xf32>
    %cst_56 = arith.constant 0.00999999977 : f32
    %94 = vector.broadcast %cst_56 : f32 to vector<8x8xf32>
    %95 = arith.mulf %94, %91 : vector<8x8xf32>
    %96 = arith.select %93, %91, %95 : vector<8x8xi1>, vector<8x8xf32>
    %cst_57 = arith.constant dense<0.000000e+00> : vector<1x8xf32>
    %97 = tpu.matmul %6, %96, %cst_57 {dimension_numbers = #tpu.dot_dimension_numbers<[1], [0], [0], [1], [0, 0, 1, 1], [], []>} : vector<1x8xf32>, vector<8x8xf32>, vector<1x8xf32> -> vector<1x8xf32>
    %98 = vector.broadcast %7 : f32 to vector<1x8xf32>
    %99 = arith.addf %97, %98 : vector<1x8xf32>
    %c2_58 = arith.constant 2 : index
    %c0_59 = arith.constant 0 : index
    %100 = vector.load %arg13[%c2_58, %c0_59] : memref<8x8xf32, #tpu.memory_space<vmem>>, vector<1x8xf32>
    tpu.vector_store %arg13[%c2_58, %c0_59], %99 {strides = array<i32>} : memref<8x8xf32, #tpu.memory_space<vmem>>, vector<1x8xf32>,
    %101 = vector.extract_strided_slice %1 {offsets = [0, 3], sizes = [16, 1], strides = [1, 1]} : vector<16x8xf32> to vector<16x1xf32>
    %c0_60 = arith.constant 0 : index
    %c0_61 = arith.constant 0 : index
    %c0_62 = arith.constant 0 : index
    %102 = vector.load %arg3[%c0_60, %c0_61, %c0_62] : memref<1x16x8xf32, #tpu.memory_space<vmem>>, vector<1x16x8xf32>
    %103 = vector.shape_cast %102 : vector<1x16x8xf32> to vector<16x8xf32>
    %104 = vector.broadcast %101 : vector<16x1xf32> to vector<16x8xf32>
    %105 = arith.subf %103, %104 : vector<16x8xf32>
    %106 = arith.mulf %105, %105 : vector<16x8xf32>
    %cst_63 = arith.constant dense<0.000000e+00> : vector<8xf32>
    %107 = vector.multi_reduction <add>, %106, %cst_63 [0] : vector<16x8xf32> to vector<8xf32>
    %108 = vector.shape_cast %107 : vector<8xf32> to vector<1x8xf32>
    %cst_64 = arith.constant 0.000000e+00 : f32
    %109 = vector.broadcast %cst_64 : f32 to vector<1x8xf32>
    %110 = arith.subf %109, %108 : vector<1x8xf32>
    %c3 = arith.constant 3 : index
    %c0_65 = arith.constant 0 : index
    %111 = vector.load %arg14[%c3, %c0_65] : memref<8x8xf32, #tpu.memory_space<vmem>>, vector<1x8xf32>
    tpu.vector_store %arg14[%c3, %c0_65], %110 {strides = array<i32>} : memref<8x8xf32, #tpu.memory_space<vmem>>, vector<1x8xf32>,
    %cst_66 = arith.constant dense<0.000000e+00> : vector<16x8xf32>
    %112 = tpu.matmul %2, %106, %cst_66 {dimension_numbers = #tpu.dot_dimension_numbers<[1], [0], [0], [1], [0, 0, 1, 1], [], []>} : vector<16x16xf32>, vector<16x8xf32>, vector<16x8xf32> -> vector<16x8xf32>
    %113 = vector.broadcast %3 : vector<16x1xf32> to vector<16x8xf32>
    %114 = arith.addf %112, %113 : vector<16x8xf32>
    %cst_67 = arith.constant 0.000000e+00 : f32
    %115 = vector.broadcast %cst_67 : f32 to vector<16x8xf32>
    %116 = arith.cmpf ogt, %114, %115 : vector<16x8xf32>
    %cst_68 = arith.constant 0.00999999977 : f32
    %117 = vector.broadcast %cst_68 : f32 to vector<16x8xf32>
    %118 = arith.mulf %117, %114 : vector<16x8xf32>
    %119 = arith.select %116, %114, %118 : vector<16x8xi1>, vector<16x8xf32>
    %cst_69 = arith.constant dense<0.000000e+00> : vector<8x8xf32>
    %120 = tpu.matmul %4, %119, %cst_69 {dimension_numbers = #tpu.dot_dimension_numbers<[1], [0], [0], [1], [0, 0, 1, 1], [], []>} : vector<8x16xf32>, vector<16x8xf32>, vector<8x8xf32> -> vector<8x8xf32>
    %121 = vector.broadcast %5 : vector<8x1xf32> to vector<8x8xf32>
    %122 = arith.addf %120, %121 : vector<8x8xf32>
    %cst_70 = arith.constant 0.000000e+00 : f32
    %123 = vector.broadcast %cst_70 : f32 to vector<8x8xf32>
    %124 = arith.cmpf ogt, %122, %123 : vector<8x8xf32>
    %cst_71 = arith.constant 0.00999999977 : f32
    %125 = vector.broadcast %cst_71 : f32 to vector<8x8xf32>
    %126 = arith.mulf %125, %122 : vector<8x8xf32>
    %127 = arith.select %124, %122, %126 : vector<8x8xi1>, vector<8x8xf32>
    %cst_72 = arith.constant dense<0.000000e+00> : vector<1x8xf32>
    %128 = tpu.matmul %6, %127, %cst_72 {dimension_numbers = #tpu.dot_dimension_numbers<[1], [0], [0], [1], [0, 0, 1, 1], [], []>} : vector<1x8xf32>, vector<8x8xf32>, vector<1x8xf32> -> vector<1x8xf32>
    %129 = vector.broadcast %7 : f32 to vector<1x8xf32>
    %130 = arith.addf %128, %129 : vector<1x8xf32>
    %c3_73 = arith.constant 3 : index
    %c0_74 = arith.constant 0 : index
    %131 = vector.load %arg13[%c3_73, %c0_74] : memref<8x8xf32, #tpu.memory_space<vmem>>, vector<1x8xf32>
    tpu.vector_store %arg13[%c3_73, %c0_74], %130 {strides = array<i32>} : memref<8x8xf32, #tpu.memory_space<vmem>>, vector<1x8xf32>,
    %132 = vector.extract_strided_slice %1 {offsets = [0, 4], sizes = [16, 1], strides = [1, 1]} : vector<16x8xf32> to vector<16x1xf32>
    %c0_75 = arith.constant 0 : index
    %c0_76 = arith.constant 0 : index
    %c0_77 = arith.constant 0 : index
    %133 = vector.load %arg3[%c0_75, %c0_76, %c0_77] : memref<1x16x8xf32, #tpu.memory_space<vmem>>, vector<1x16x8xf32>
    %134 = vector.shape_cast %133 : vector<1x16x8xf32> to vector<16x8xf32>
    %135 = vector.broadcast %132 : vector<16x1xf32> to vector<16x8xf32>
    %136 = arith.subf %134, %135 : vector<16x8xf32>
    %137 = arith.mulf %136, %136 : vector<16x8xf32>
    %cst_78 = arith.constant dense<0.000000e+00> : vector<8xf32>
    %138 = vector.multi_reduction <add>, %137, %cst_78 [0] : vector<16x8xf32> to vector<8xf32>
    %139 = vector.shape_cast %138 : vector<8xf32> to vector<1x8xf32>
    %cst_79 = arith.constant 0.000000e+00 : f32
    %140 = vector.broadcast %cst_79 : f32 to vector<1x8xf32>
    %141 = arith.subf %140, %139 : vector<1x8xf32>
    %c4 = arith.constant 4 : index
    %c0_80 = arith.constant 0 : index
    %142 = vector.load %arg14[%c4, %c0_80] : memref<8x8xf32, #tpu.memory_space<vmem>>, vector<1x8xf32>
    tpu.vector_store %arg14[%c4, %c0_80], %141 {strides = array<i32>} : memref<8x8xf32, #tpu.memory_space<vmem>>, vector<1x8xf32>,
    %cst_81 = arith.constant dense<0.000000e+00> : vector<16x8xf32>
    %143 = tpu.matmul %2, %137, %cst_81 {dimension_numbers = #tpu.dot_dimension_numbers<[1], [0], [0], [1], [0, 0, 1, 1], [], []>} : vector<16x16xf32>, vector<16x8xf32>, vector<16x8xf32> -> vector<16x8xf32>
    %144 = vector.broadcast %3 : vector<16x1xf32> to vector<16x8xf32>
    %145 = arith.addf %143, %144 : vector<16x8xf32>
    %cst_82 = arith.constant 0.000000e+00 : f32
    %146 = vector.broadcast %cst_82 : f32 to vector<16x8xf32>
    %147 = arith.cmpf ogt, %145, %146 : vector<16x8xf32>
    %cst_83 = arith.constant 0.00999999977 : f32
    %148 = vector.broadcast %cst_83 : f32 to vector<16x8xf32>
    %149 = arith.mulf %148, %145 : vector<16x8xf32>
    %150 = arith.select %147, %145, %149 : vector<16x8xi1>, vector<16x8xf32>
    %cst_84 = arith.constant dense<0.000000e+00> : vector<8x8xf32>
    %151 = tpu.matmul %4, %150, %cst_84 {dimension_numbers = #tpu.dot_dimension_numbers<[1], [0], [0], [1], [0, 0, 1, 1], [], []>} : vector<8x16xf32>, vector<16x8xf32>, vector<8x8xf32> -> vector<8x8xf32>
    %152 = vector.broadcast %5 : vector<8x1xf32> to vector<8x8xf32>
    %153 = arith.addf %151, %152 : vector<8x8xf32>
    %cst_85 = arith.constant 0.000000e+00 : f32
    %154 = vector.broadcast %cst_85 : f32 to vector<8x8xf32>
    %155 = arith.cmpf ogt, %153, %154 : vector<8x8xf32>
    %cst_86 = arith.constant 0.00999999977 : f32
    %156 = vector.broadcast %cst_86 : f32 to vector<8x8xf32>
    %157 = arith.mulf %156, %153 : vector<8x8xf32>
    %158 = arith.select %155, %153, %157 : vector<8x8xi1>, vector<8x8xf32>
    %cst_87 = arith.constant dense<0.000000e+00> : vector<1x8xf32>
    %159 = tpu.matmul %6, %158, %cst_87 {dimension_numbers = #tpu.dot_dimension_numbers<[1], [0], [0], [1], [0, 0, 1, 1], [], []>} : vector<1x8xf32>, vector<8x8xf32>, vector<1x8xf32> -> vector<1x8xf32>
    %160 = vector.broadcast %7 : f32 to vector<1x8xf32>
    %161 = arith.addf %159, %160 : vector<1x8xf32>
    %c4_88 = arith.constant 4 : index
    %c0_89 = arith.constant 0 : index
    %162 = vector.load %arg13[%c4_88, %c0_89] : memref<8x8xf32, #tpu.memory_space<vmem>>, vector<1x8xf32>
    tpu.vector_store %arg13[%c4_88, %c0_89], %161 {strides = array<i32>} : memref<8x8xf32, #tpu.memory_space<vmem>>, vector<1x8xf32>,
    %163 = vector.extract_strided_slice %1 {offsets = [0, 5], sizes = [16, 1], strides = [1, 1]} : vector<16x8xf32> to vector<16x1xf32>
    %c0_90 = arith.constant 0 : index
    %c0_91 = arith.constant 0 : index
    %c0_92 = arith.constant 0 : index
    %164 = vector.load %arg3[%c0_90, %c0_91, %c0_92] : memref<1x16x8xf32, #tpu.memory_space<vmem>>, vector<1x16x8xf32>
    %165 = vector.shape_cast %164 : vector<1x16x8xf32> to vector<16x8xf32>
    %166 = vector.broadcast %163 : vector<16x1xf32> to vector<16x8xf32>
    %167 = arith.subf %165, %166 : vector<16x8xf32>
    %168 = arith.mulf %167, %167 : vector<16x8xf32>
    %cst_93 = arith.constant dense<0.000000e+00> : vector<8xf32>
    %169 = vector.multi_reduction <add>, %168, %cst_93 [0] : vector<16x8xf32> to vector<8xf32>
    %170 = vector.shape_cast %169 : vector<8xf32> to vector<1x8xf32>
    %cst_94 = arith.constant 0.000000e+00 : f32
    %171 = vector.broadcast %cst_94 : f32 to vector<1x8xf32>
    %172 = arith.subf %171, %170 : vector<1x8xf32>
    %c5 = arith.constant 5 : index
    %c0_95 = arith.constant 0 : index
    %173 = vector.load %arg14[%c5, %c0_95] : memref<8x8xf32, #tpu.memory_space<vmem>>, vector<1x8xf32>
    tpu.vector_store %arg14[%c5, %c0_95], %172 {strides = array<i32>} : memref<8x8xf32, #tpu.memory_space<vmem>>, vector<1x8xf32>,
    %cst_96 = arith.constant dense<0.000000e+00> : vector<16x8xf32>
    %174 = tpu.matmul %2, %168, %cst_96 {dimension_numbers = #tpu.dot_dimension_numbers<[1], [0], [0], [1], [0, 0, 1, 1], [], []>} : vector<16x16xf32>, vector<16x8xf32>, vector<16x8xf32> -> vector<16x8xf32>
    %175 = vector.broadcast %3 : vector<16x1xf32> to vector<16x8xf32>
    %176 = arith.addf %174, %175 : vector<16x8xf32>
    %cst_97 = arith.constant 0.000000e+00 : f32
    %177 = vector.broadcast %cst_97 : f32 to vector<16x8xf32>
    %178 = arith.cmpf ogt, %176, %177 : vector<16x8xf32>
    %cst_98 = arith.constant 0.00999999977 : f32
    %179 = vector.broadcast %cst_98 : f32 to vector<16x8xf32>
    %180 = arith.mulf %179, %176 : vector<16x8xf32>
    %181 = arith.select %178, %176, %180 : vector<16x8xi1>, vector<16x8xf32>
    %cst_99 = arith.constant dense<0.000000e+00> : vector<8x8xf32>
    %182 = tpu.matmul %4, %181, %cst_99 {dimension_numbers = #tpu.dot_dimension_numbers<[1], [0], [0], [1], [0, 0, 1, 1], [], []>} : vector<8x16xf32>, vector<16x8xf32>, vector<8x8xf32> -> vector<8x8xf32>
    %183 = vector.broadcast %5 : vector<8x1xf32> to vector<8x8xf32>
    %184 = arith.addf %182, %183 : vector<8x8xf32>
    %cst_100 = arith.constant 0.000000e+00 : f32
    %185 = vector.broadcast %cst_100 : f32 to vector<8x8xf32>
    %186 = arith.cmpf ogt, %184, %185 : vector<8x8xf32>
    %cst_101 = arith.constant 0.00999999977 : f32
    %187 = vector.broadcast %cst_101 : f32 to vector<8x8xf32>
    %188 = arith.mulf %187, %184 : vector<8x8xf32>
    %189 = arith.select %186, %184, %188 : vector<8x8xi1>, vector<8x8xf32>
    %cst_102 = arith.constant dense<0.000000e+00> : vector<1x8xf32>
    %190 = tpu.matmul %6, %189, %cst_102 {dimension_numbers = #tpu.dot_dimension_numbers<[1], [0], [0], [1], [0, 0, 1, 1], [], []>} : vector<1x8xf32>, vector<8x8xf32>, vector<1x8xf32> -> vector<1x8xf32>
    %191 = vector.broadcast %7 : f32 to vector<1x8xf32>
    %192 = arith.addf %190, %191 : vector<1x8xf32>
    %c5_103 = arith.constant 5 : index
    %c0_104 = arith.constant 0 : index
    %193 = vector.load %arg13[%c5_103, %c0_104] : memref<8x8xf32, #tpu.memory_space<vmem>>, vector<1x8xf32>
    tpu.vector_store %arg13[%c5_103, %c0_104], %192 {strides = array<i32>} : memref<8x8xf32, #tpu.memory_space<vmem>>, vector<1x8xf32>,
    %194 = vector.extract_strided_slice %1 {offsets = [0, 6], sizes = [16, 1], strides = [1, 1]} : vector<16x8xf32> to vector<16x1xf32>
    %c0_105 = arith.constant 0 : index
    %c0_106 = arith.constant 0 : index
    %c0_107 = arith.constant 0 : index
    %195 = vector.load %arg3[%c0_105, %c0_106, %c0_107] : memref<1x16x8xf32, #tpu.memory_space<vmem>>, vector<1x16x8xf32>
    %196 = vector.shape_cast %195 : vector<1x16x8xf32> to vector<16x8xf32>
    %197 = vector.broadcast %194 : vector<16x1xf32> to vector<16x8xf32>
    %198 = arith.subf %196, %197 : vector<16x8xf32>
    %199 = arith.mulf %198, %198 : vector<16x8xf32>
    %cst_108 = arith.constant dense<0.000000e+00> : vector<8xf32>
    %200 = vector.multi_reduction <add>, %199, %cst_108 [0] : vector<16x8xf32> to vector<8xf32>
    %201 = vector.shape_cast %200 : vector<8xf32> to vector<1x8xf32>
    %cst_109 = arith.constant 0.000000e+00 : f32
    %202 = vector.broadcast %cst_109 : f32 to vector<1x8xf32>
    %203 = arith.subf %202, %201 : vector<1x8xf32>
    %c6 = arith.constant 6 : index
    %c0_110 = arith.constant 0 : index
    %204 = vector.load %arg14[%c6, %c0_110] : memref<8x8xf32, #tpu.memory_space<vmem>>, vector<1x8xf32>
    tpu.vector_store %arg14[%c6, %c0_110], %203 {strides = array<i32>} : memref<8x8xf32, #tpu.memory_space<vmem>>, vector<1x8xf32>,
    %cst_111 = arith.constant dense<0.000000e+00> : vector<16x8xf32>
    %205 = tpu.matmul %2, %199, %cst_111 {dimension_numbers = #tpu.dot_dimension_numbers<[1], [0], [0], [1], [0, 0, 1, 1], [], []>} : vector<16x16xf32>, vector<16x8xf32>, vector<16x8xf32> -> vector<16x8xf32>
    %206 = vector.broadcast %3 : vector<16x1xf32> to vector<16x8xf32>
    %207 = arith.addf %205, %206 : vector<16x8xf32>
    %cst_112 = arith.constant 0.000000e+00 : f32
    %208 = vector.broadcast %cst_112 : f32 to vector<16x8xf32>
    %209 = arith.cmpf ogt, %207, %208 : vector<16x8xf32>
    %cst_113 = arith.constant 0.00999999977 : f32
    %210 = vector.broadcast %cst_113 : f32 to vector<16x8xf32>
    %211 = arith.mulf %210, %207 : vector<16x8xf32>
    %212 = arith.select %209, %207, %211 : vector<16x8xi1>, vector<16x8xf32>
    %cst_114 = arith.constant dense<0.000000e+00> : vector<8x8xf32>
    %213 = tpu.matmul %4, %212, %cst_114 {dimension_numbers = #tpu.dot_dimension_numbers<[1], [0], [0], [1], [0, 0, 1, 1], [], []>} : vector<8x16xf32>, vector<16x8xf32>, vector<8x8xf32> -> vector<8x8xf32>
    %214 = vector.broadcast %5 : vector<8x1xf32> to vector<8x8xf32>
    %215 = arith.addf %213, %214 : vector<8x8xf32>
    %cst_115 = arith.constant 0.000000e+00 : f32
    %216 = vector.broadcast %cst_115 : f32 to vector<8x8xf32>
    %217 = arith.cmpf ogt, %215, %216 : vector<8x8xf32>
    %cst_116 = arith.constant 0.00999999977 : f32
    %218 = vector.broadcast %cst_116 : f32 to vector<8x8xf32>
    %219 = arith.mulf %218, %215 : vector<8x8xf32>
    %220 = arith.select %217, %215, %219 : vector<8x8xi1>, vector<8x8xf32>
    %cst_117 = arith.constant dense<0.000000e+00> : vector<1x8xf32>
    %221 = tpu.matmul %6, %220, %cst_117 {dimension_numbers = #tpu.dot_dimension_numbers<[1], [0], [0], [1], [0, 0, 1, 1], [], []>} : vector<1x8xf32>, vector<8x8xf32>, vector<1x8xf32> -> vector<1x8xf32>
    %222 = vector.broadcast %7 : f32 to vector<1x8xf32>
    %223 = arith.addf %221, %222 : vector<1x8xf32>
    %c6_118 = arith.constant 6 : index
    %c0_119 = arith.constant 0 : index
    %224 = vector.load %arg13[%c6_118, %c0_119] : memref<8x8xf32, #tpu.memory_space<vmem>>, vector<1x8xf32>
    tpu.vector_store %arg13[%c6_118, %c0_119], %223 {strides = array<i32>} : memref<8x8xf32, #tpu.memory_space<vmem>>, vector<1x8xf32>,
    %225 = vector.extract_strided_slice %1 {offsets = [0, 7], sizes = [16, 1], strides = [1, 1]} : vector<16x8xf32> to vector<16x1xf32>
    %c0_120 = arith.constant 0 : index
    %c0_121 = arith.constant 0 : index
    %c0_122 = arith.constant 0 : index
    %226 = vector.load %arg3[%c0_120, %c0_121, %c0_122] : memref<1x16x8xf32, #tpu.memory_space<vmem>>, vector<1x16x8xf32>
    %227 = vector.shape_cast %226 : vector<1x16x8xf32> to vector<16x8xf32>
    %228 = vector.broadcast %225 : vector<16x1xf32> to vector<16x8xf32>
    %229 = arith.subf %227, %228 : vector<16x8xf32>
    %230 = arith.mulf %229, %229 : vector<16x8xf32>
    %cst_123 = arith.constant dense<0.000000e+00> : vector<8xf32>
    %231 = vector.multi_reduction <add>, %230, %cst_123 [0] : vector<16x8xf32> to vector<8xf32>
    %232 = vector.shape_cast %231 : vector<8xf32> to vector<1x8xf32>
    %cst_124 = arith.constant 0.000000e+00 : f32
    %233 = vector.broadcast %cst_124 : f32 to vector<1x8xf32>
    %234 = arith.subf %233, %232 : vector<1x8xf32>
    %c7 = arith.constant 7 : index
    %c0_125 = arith.constant 0 : index
    %235 = vector.load %arg14[%c7, %c0_125] : memref<8x8xf32, #tpu.memory_space<vmem>>, vector<1x8xf32>
    tpu.vector_store %arg14[%c7, %c0_125], %234 {strides = array<i32>} : memref<8x8xf32, #tpu.memory_space<vmem>>, vector<1x8xf32>,
    %cst_126 = arith.constant dense<0.000000e+00> : vector<16x8xf32>
    %236 = tpu.matmul %2, %230, %cst_126 {dimension_numbers = #tpu.dot_dimension_numbers<[1], [0], [0], [1], [0, 0, 1, 1], [], []>} : vector<16x16xf32>, vector<16x8xf32>, vector<16x8xf32> -> vector<16x8xf32>
    %237 = vector.broadcast %3 : vector<16x1xf32> to vector<16x8xf32>
    %238 = arith.addf %236, %237 : vector<16x8xf32>
    %cst_127 = arith.constant 0.000000e+00 : f32
    %239 = vector.broadcast %cst_127 : f32 to vector<16x8xf32>
    %240 = arith.cmpf ogt, %238, %239 : vector<16x8xf32>
    %cst_128 = arith.constant 0.00999999977 : f32
    %241 = vector.broadcast %cst_128 : f32 to vector<16x8xf32>
    %242 = arith.mulf %241, %238 : vector<16x8xf32>
    %243 = arith.select %240, %238, %242 : vector<16x8xi1>, vector<16x8xf32>
    %cst_129 = arith.constant dense<0.000000e+00> : vector<8x8xf32>
    %244 = tpu.matmul %4, %243, %cst_129 {dimension_numbers = #tpu.dot_dimension_numbers<[1], [0], [0], [1], [0, 0, 1, 1], [], []>} : vector<8x16xf32>, vector<16x8xf32>, vector<8x8xf32> -> vector<8x8xf32>
    %245 = vector.broadcast %5 : vector<8x1xf32> to vector<8x8xf32>
    %246 = arith.addf %244, %245 : vector<8x8xf32>
    %cst_130 = arith.constant 0.000000e+00 : f32
    %247 = vector.broadcast %cst_130 : f32 to vector<8x8xf32>
    %248 = arith.cmpf ogt, %246, %247 : vector<8x8xf32>
    %cst_131 = arith.constant 0.00999999977 : f32
    %249 = vector.broadcast %cst_131 : f32 to vector<8x8xf32>
    %250 = arith.mulf %249, %246 : vector<8x8xf32>
    %251 = arith.select %248, %246, %250 : vector<8x8xi1>, vector<8x8xf32>
    %cst_132 = arith.constant dense<0.000000e+00> : vector<1x8xf32>
    %252 = tpu.matmul %6, %251, %cst_132 {dimension_numbers = #tpu.dot_dimension_numbers<[1], [0], [0], [1], [0, 0, 1, 1], [], []>} : vector<1x8xf32>, vector<8x8xf32>, vector<1x8xf32> -> vector<1x8xf32>
    %253 = vector.broadcast %7 : f32 to vector<1x8xf32>
    %254 = arith.addf %252, %253 : vector<1x8xf32>
    %c7_133 = arith.constant 7 : index
    %c0_134 = arith.constant 0 : index
    %255 = vector.load %arg13[%c7_133, %c0_134] : memref<8x8xf32, #tpu.memory_space<vmem>>, vector<1x8xf32>
    tpu.vector_store %arg13[%c7_133, %c0_134], %254 {strides = array<i32>} : memref<8x8xf32, #tpu.memory_space<vmem>>, vector<1x8xf32>,
    %c0_135 = arith.constant 0 : index
    %c0_136 = arith.constant 0 : index
    %256 = vector.load %arg14[%c0_135, %c0_136] : memref<8x8xf32, #tpu.memory_space<vmem>>, vector<8x8xf32>
    %c0_137 = arith.constant 0 : index
    %c0_138 = arith.constant 0 : index
    %c0_139 = arith.constant 0 : index
    %257 = vector.load %arg12[%c0_137, %c0_138, %c0_139] : memref<1x8x8xf32, #tpu.memory_space<vmem>>, vector<1x8x8xf32>
    %258 = vector.shape_cast %257 : vector<1x8x8xf32> to vector<8x8xf32>
    %259 = vector.shape_cast %256 : vector<8x8xf32> to vector<1x8x8xf32>
    tpu.vector_store %arg12[%c0_137, %c0_138, %c0_139], %259 {strides = array<i32>} : memref<1x8x8xf32, #tpu.memory_space<vmem>>, vector<1x8x8xf32>,
    %c0_140 = arith.constant 0 : index
    %c0_141 = arith.constant 0 : index
    %260 = vector.load %arg13[%c0_140, %c0_141] : memref<8x8xf32, #tpu.memory_space<vmem>>, vector<8x8xf32>
    %cst_142 = arith.constant 5.000000e-01 : f32
    %261 = vector.broadcast %cst_142 : f32 to vector<8x8xf32>
    %262 = arith.mulf %261, %260 : vector<8x8xf32>
    %263 = math.tanh %262 : vector<8x8xf32>
    %cst_143 = arith.constant 5.000000e-01 : f32
    %264 = vector.broadcast %cst_143 : f32 to vector<8x8xf32>
    %265 = arith.mulf %264, %263 : vector<8x8xf32>
    %cst_144 = arith.constant 5.000000e-01 : f32
    %266 = vector.broadcast %cst_144 : f32 to vector<8x8xf32>
    %267 = arith.addf %265, %266 : vector<8x8xf32>
    %268 = tpu.iota {dimensions = array<i32: 0>} : vector<8x8xi32>
    %c8_i32 = arith.constant 8 : i32
    %269 = arith.muli %arg1, %c8_i32 : i32
    %270 = vector.broadcast %269 : i32 to vector<8x8xi32>
    %271 = arith.addi %268, %270 : vector<8x8xi32>
    %272 = tpu.iota {dimensions = array<i32: 1>} : vector<8x8xi32>
    %273 = arith.cmpi eq, %271, %272 : vector<8x8xi32>
    %c0_145 = arith.constant 0 : index
    %c0_146 = arith.constant 0 : index
    %c0_147 = arith.constant 0 : index
    %274 = vector.load %arg4[%c0_145, %c0_146, %c0_147] : memref<1x8x8xf32, #tpu.memory_space<vmem>>, vector<1x8x8xf32>
    %275 = vector.shape_cast %274 : vector<1x8x8xf32> to vector<8x8xf32>
    %cst_148 = arith.constant 0.000000e+00 : f32
    %276 = vector.broadcast %cst_148 : f32 to vector<8x8xf32>
    %277 = arith.select %273, %276, %275 : vector<8x8xi1>, vector<8x8xf32>
    %cst_149 = arith.constant dense<0.000000e+00> : vector<8xf32>
    %278 = vector.multi_reduction <add>, %277, %cst_149 [1] : vector<8x8xf32> to vector<8xf32>
    %279 = vector.shape_cast %278 : vector<8xf32> to vector<8x1xf32>
    %280 = arith.mulf %267, %277 : vector<8x8xf32>
    %281 = math.absf %280 : vector<8x8xf32>
    %cst_150 = arith.constant dense<0.000000e+00> : vector<8xf32>
    %282 = vector.multi_reduction <add>, %281, %cst_150 [1] : vector<8x8xf32> to vector<8xf32>
    %283 = vector.shape_cast %282 : vector<8xf32> to vector<8x1xf32>
    %cst_151 = arith.constant 9.99999996E-13 : f32
    %284 = vector.broadcast %cst_151 : f32 to vector<8x1xf32>
    %285 = arith.maximumf %283, %284 : vector<8x1xf32>
    %286 = tpu.reciprocal %285 : vector<8x1xf32> -> vector<8x1xf32>
    %287 = arith.mulf %286, %279 : vector<8x1xf32>
    %288 = vector.broadcast %287 : vector<8x1xf32> to vector<8x8xf32>
    %289 = arith.mulf %280, %288 : vector<8x8xf32>
    %cst_152 = arith.constant 1.000000e+00 : f32
    %290 = vector.broadcast %cst_152 : f32 to vector<8x8xf32>
    %291 = arith.addf %289, %290 : vector<8x8xf32>
    %292 = arith.select %273, %291, %289 : vector<8x8xi1>, vector<8x8xf32>
    %cst_153 = arith.constant 9.99999997E-7 : f32
    %293 = vector.broadcast %cst_153 : f32 to vector<8x8xf32>
    %294 = arith.addf %292, %293 : vector<8x8xf32>
    %cst_154 = arith.constant dense<0.000000e+00> : vector<8xf32>
    %295 = vector.multi_reduction <add>, %294, %cst_154 [1] : vector<8x8xf32> to vector<8xf32>
    %296 = vector.shape_cast %295 : vector<8xf32> to vector<8x1xf32>
    %297 = tpu.reciprocal %296 : vector<8x1xf32> -> vector<8x1xf32>
    %298 = vector.broadcast %297 : vector<8x1xf32> to vector<8x8xf32>
    %299 = arith.mulf %294, %298 : vector<8x8xf32>
    %c0_155 = arith.constant 0 : index
    %c0_156 = arith.constant 0 : index
    %c0_157 = arith.constant 0 : index
    %300 = vector.load %arg11[%c0_155, %c0_156, %c0_157] : memref<1x8x8xf32, #tpu.memory_space<vmem>>, vector<1x8x8xf32>
    %301 = vector.shape_cast %300 : vector<1x8x8xf32> to vector<8x8xf32>
    %302 = vector.shape_cast %299 : vector<8x8xf32> to vector<1x8x8xf32>
    tpu.vector_store %arg11[%c0_155, %c0_156, %c0_157], %302 {strides = array<i32>} : memref<1x8x8xf32, #tpu.memory_space<vmem>>, vector<1x8x8xf32>,
    return
  }
  func.func @transform_0(%arg0: i32, %arg1: i32) -> (i32, i32, i32, i32) {
    %c0_i32 = arith.constant 0 : i32
    %c0_i32_0 = arith.constant 0 : i32
    %c0_i32_1 = arith.constant 0 : i32
    return %arg0, %arg1, %c0_i32, %c0_i32_0 : i32, i32, i32, i32
  }
  func.func @transform_1(%arg0: i32, %arg1: i32) -> (i32, i32, i32) {
    %c0_i32 = arith.constant 0 : i32
    %c0_i32_0 = arith.constant 0 : i32
    %c0_i32_1 = arith.constant 0 : i32
    return %arg0, %c0_i32, %c0_i32_0 : i32, i32, i32
  }
  func.func @transform_2(%arg0: i32, %arg1: i32) -> (i32, i32, i32) {
    %c0_i32 = arith.constant 0 : i32
    %c0_i32_0 = arith.constant 0 : i32
    return %arg0, %arg1, %c0_i32 : i32, i32, i32
  }
  func.func @transform_3(%arg0: i32, %arg1: i32) -> (i32, i32) {
    %c0_i32 = arith.constant 0 : i32
    %c0_i32_0 = arith.constant 0 : i32
    %c0_i32_1 = arith.constant 0 : i32
    return %c0_i32, %c0_i32_0 : i32, i32
  }
  func.func @transform_4(%arg0: i32, %arg1: i32) -> (i32, i32) {
    %c0_i32 = arith.constant 0 : i32
    %c0_i32_0 = arith.constant 0 : i32
    %c0_i32_1 = arith.constant 0 : i32
    return %c0_i32, %c0_i32_0 : i32, i32
  }
  func.func @transform_5(%arg0: i32, %arg1: i32) -> (i32, i32) {
    %c0_i32 = arith.constant 0 : i32
    %c0_i32_0 = arith.constant 0 : i32
    %c0_i32_1 = arith.constant 0 : i32
    return %c0_i32, %c0_i32_0 : i32, i32
  }
  func.func @transform_6(%arg0: i32, %arg1: i32) -> (i32, i32) {
    %c0_i32 = arith.constant 0 : i32
    %c0_i32_0 = arith.constant 0 : i32
    %c0_i32_1 = arith.constant 0 : i32
    return %c0_i32, %c0_i32_0 : i32, i32
  }
  func.func @transform_7(%arg0: i32, %arg1: i32) -> (i32, i32) {
    %c0_i32 = arith.constant 0 : i32
    %c0_i32_0 = arith.constant 0 : i32
    %c0_i32_1 = arith.constant 0 : i32
    return %c0_i32, %c0_i32_0 : i32, i32
  }
  func.func @transform_8(%arg0: i32, %arg1: i32) -> (i32, i32) {
    %c0_i32 = arith.constant 0 : i32
    %c0_i32_0 = arith.constant 0 : i32
    %c0_i32_1 = arith.constant 0 : i32
    return %c0_i32, %c0_i32_0 : i32, i32
  }
  func.func @transform_9(%arg0: i32, %arg1: i32) -> (i32, i32, i32) {
    %c0_i32 = arith.constant 0 : i32
    %c0_i32_0 = arith.constant 0 : i32
    return %arg0, %arg1, %c0_i32 : i32, i32, i32
  }
  func.func @transform_10(%arg0: i32, %arg1: i32) -> (i32, i32, i32) {
    %c0_i32 = arith.constant 0 : i32
    %c0_i32_0 = arith.constant 0 : i32
    return %arg0, %arg1, %c0_i32 : i32, i32, i32
  }
}

</mosaic_0001>

<bundles_post_ra>
// kernel: tpu_custom_call.1
= control target key start
LH: loop header
LB: loop body
LE: loop exit
PB: predicated region body
PF: predicated region fallthrough
CT: control target
= control target key end

     0   :  { %s3741_s0 = inlined_call_operand.vmem [shape: f32[2,1,16,8], index: 0, kind: input, shape index: {}]   ;;  %s3742_s1 = inlined_call_operand.vmem [shape: f32[2,16,8], index: 1, kind: input, shape index: {}]   ;;  %s3743_s2 = inlined_call_operand.vmem [shape: f32[2,8,8], index: 2, kind: input, shape index: {}]   ;;  %s3744_s3 = inlined_call_operand.vmem [shape: f32[16,16], index: 3, kind: input, shape index: {}]   ;;  %s3745_s4 = inlined_call_operand.vmem [shape: f32[16,1], index: 4, kind: input, shape index: {}]   ;;  %s3746_s5 = inlined_call_operand.vmem [shape: f32[8,16], index: 5, kind: input, shape index: {}]   ;;  %s3747_s6 = inlined_call_operand.vmem [shape: f32[8,1], index: 6, kind: input, shape index: {}]   ;;  %s3748_s7 = inlined_call_operand.vmem [shape: f32[1,8], index: 7, kind: input, shape index: {}]   ;;  %s3749_s8 = inlined_call_operand.<no memory space> [shape: f32[1,1], index: 8, kind: input, shape index: {}]   ;;  %s3750_s9 = inlined_call_operand.hbm [shape: f32[2,8,8], index: 9, kind: output, shape index: {0}]   ;;  %s3751_s10 = inlined_call_operand.hbm [shape: f32[2,8,8], index: 10, kind: output, shape index: {1}]  }
   0x1   :  { %3754 = sst [smem:[#allocation11_spill]] %s3741_s0 }
   0x2   :  { %16 = sst [smem:[#allocation4]] %s3749_s8 }
   0x3   :  { %17 = vsyncpa [#allocation6], 0 }
   0x4   :  { %19 = vsyncpa [#allocation6 + $0x1], 0 }
   0x5   :  { %20 = vsyncpa [#allocation8], 0 }
   0x6   :  { %22 = vsyncpa [#allocation8 + $0x1], 0  ;;  %s3308_s15 = smov 0   ;;  %s3310_s16 = smov 0  }
   0x7   :  { %s3312_s17 = smov 0   ;;  %s3314_s18 = smov 0  }
   0x8   :  { %s3316_s19 = smov 0   ;;  %s3318_s20 = smov 0  }
   0x9 LB: > { %s2700_s8 = sadd.s32 4294967295, %s3235_s20   ;;  %s2701_s21 = sadd.s32 4294967294, %s3235_s20   ;;  %s3235_s20 = sphi %s3318_s20, %s28_s20   ;;  %s3231_s19 = sphi %s3316_s19, %s3764_s19   ;;  %s3227_s18 = sphi %s3314_s18, %s3763_s18   ;;  %s3223_s17 = sphi %s3312_s17, %s3762_s17   ;;  %s3219_s16 = sphi %s3310_s16, %s3761_s16   ;;  %s3215_s15 = sphi %s3308_s15, %s3760_s15  }
   0xa   : > { %s40_s22 = sadd.s32 1, %s3231_s19  ;;  %s257_s23 = sadd.s32 1, %s3223_s17 }
   0xb   : > { %p42_p0 = scmp.ge.s32.totalorder %s40_s22, 2  ;;  %p267_p1 = scmp.ne.s32.totalorder %s3223_s17, %s3219_s16 }
   0xc   : > { %p268_p2 = scmp.eq.s32.totalorder %s2700_s8, 1  ;;  %p273_p3 = scmp.ne.s32.totalorder %s3219_s16, %s3215_s15 }
   0xd   : > { %s3766_s22 = smov (%p42_p0, %s40_s22), 0  ;;  %p274_p5 = scmp.eq.s32.totalorder %s2701_s21, 1 }
   0xe   : > { %p3348_p4 = por %p268_p2, %p267_p1  ;;  %s252_s25 = ssub.s32 %s3231_s19, %s3766_s22 }
   0xf   : > { %p2704_p6 = scmp.ge.s32.totalorder %s3235_s20, 1  ;;  %p255_p7 = scmp.eq.s32.totalorder %s252_s25, 0 }
  0x10   : > { %p3355_p8 = por %p274_p5, %p273_p3  ;;  %p368_p9 = scmp.lt.s32.totalorder %s3235_s20, 3 }
  0x11   : > { %s3361_s27 = scalar_select %p255_p7, %s3223_s17, %s257_s23  }
  0x12   : > { %p369_p10 = pnand %p2704_p6, %p368_p9 }
  0x13   : > { %v452_v0 = vld [vmem:[%s3745_s4] sm:$0xff] (!%p369_p10)  ;;  %p427_p11 = scmp.lt.s32.totalorder (!%p369_p10), %s3227_s18, 1  ;;  %v3237_v1 = vmov (!%p369_p10), 0   ;;  %v453_v2 = vld [vmem:[%s3745_s4 + $0x8] sm:$0xff] (!%p369_p10)  ;;  %s3757_s0 = sld [smem:[#allocation11_spill]] (!%p369_p10)  ;;  %v3238_v5 = vmov (!%p369_p10), 1  }
  0x14   : > { %372 = sbr.rel (%p369_p10) target bundleno = 2782 (0xade), region = 56  ;;  %3104 = vset.pattern.permute.xlu1 (!%p369_p10), %v3237_v1  ;;  %3103 = vset.pattern.permute.xlu0 (!%p369_p10), %v3237_v1  ;;  %v455_v6 = vld [vmem:[%s3747_s6] sm:$0xff] (!%p369_p10)  ;;  %vm497_vm0 = vcmask (!%p369_p10), 130048   ;;  %v3239_v8 = vmov (!%p369_p10), 2   ;;  %v3240_v9 = vmov (!%p369_p10), 3   ;;  %v3241_v10 = vmov (!%p369_p10), 4  }
  0x15   : > { %489 = vperm.xlu1 (!%p369_p10), %3104, %v452_v0   ;;  %v3385_v7 = vld [vmem:[%s3744_s3] sm:$0xff] (!%p369_p10)  ;;  %v3242_v11 = vmov (!%p369_p10), 5   ;;  %v3243_v12 = vmov (!%p369_p10), 6   ;;  %v3244_v13 = vmov (!%p369_p10), 7   ;;  %vm474_vm1 = vcmask (!%p369_p10), 64512   ;;  %v3414_v36 = vld [vmem:[%s3744_s3 + $0x8] sm:$0xff] (!%p369_p10) }
  0x16   : > { %2828 = vmatprep.mubr.msk.f32.mxu0 (!%p369_p10), %vm497_vm0, %v3385_v7  ;;  %vm485_vm2 = vcmask (!%p369_p10), 57344   ;;  %vm3246_vm3 = vmmov (!%p369_p10), 0  }
  0x19   : > { %494 = vperm.xlu1 (!%p369_p10), %3104, %v453_v2  }
  0x1b   : > { %s3368_s30 = scalar_select %p427_p11, %s3227_s18, 1 }
  0x1d   : > { %s2750_s13 = sshll.u32 %s3368_s30, 4  ;;  %3106 = vset.pattern.permute.xlu1 %v3238_v5 }
  0x1e   : > { %s435_s21 = scalar_lea.vmem %s3757_s0, %s2750_s13  ;;  %s440_s14 = scalar_lea.vmem %s3742_s1, %s2750_s13 }
  0x1f   : > { %v448_v3 = vld [vmem:[%s435_s21] sm:$0xff]  ;;  %v449_v4 = vld [vmem:[%s435_s21 + $0x8] sm:$0xff]  ;;  %s3465_s21 = sand.u32 1, %s3219_s16   ;;  %s2711_s13 = sshll.u32 %s3368_s30, 3 }
  0x20   : > { %462 = vperm.xlu0 %3103, %v448_v3   ;;  %748 = vperm.xlu1 %3106, %v449_v4   ;;  %v3396_v15 = vld [vmem:[%s440_s14] sm:$0xff]  ;;  %v3401_v19 = vld [vmem:[%s440_s14 + $0x8] sm:$0xff]  ;;  %s3752_s23 = sshll.u32 %s3465_s21, 3  ;;  %s457_s14 = sld [smem:[#allocation4]] }
  0x21   : > { %s3471_s25 = scalar_lea.vmem [#allocation7], %s3752_s23  ;;  %s447_s29 = scalar_lea.vmem %s3743_s2, %s2711_s13 }
  0x22   : > { %s3753_s30 = sshll.u32 %s3227_s18, 7  ;;  %s2563_s13 = sshll.u32 %s3471_s25, 4  ;;  %s2564_s13 = int_to_ptr.vmem [resolvable:$true] %s2563_s13 }
  0x23   : > { %s2535_s8 = scalar_lea.sflag [#allocation8], %s3465_s21  ;;  %s3125_s28 = scalar_lea.vmem %s2564_s13, 128 }
  0x24   : > { %467 = vperm.xlu0 %3103, %v449_v4   ;;  %3107 = vset.pattern.permute.xlu1 %v3237_v1  ;;  %p3126_p12 = scmp.ne.s32.totalorder %s2564_s13, %s3125_s28 }
  0x25   : > { %587 = vperm.xlu1 %3107, %v455_v6  }
  0x26   : > { %p3127_p13 = pnand %p3126_p12, %p3348_p4 }
  0x28   : > { %3105 = vset.pattern.permute.xlu0 %v3238_v5  ;;  %p3128_p0 = pneg %p3127_p13 }
  0x29   : > { %744 = vperm.xlu0 %3105, %v448_v3   ;;  %3109 = vset.pattern.permute.xlu1 %v3239_v8 }
  0x2a   : > { %998 = vperm.xlu1 %3109, %v449_v4  }
  0x2d   : > { %3108 = vset.pattern.permute.xlu0 %v3239_v8 }
  0x2e   : > { %994 = vperm.xlu0 %3108, %v448_v3   ;;  %3110 = vset.pattern.permute.xlu1 %v3240_v9 }
  0x2f   : > { %1244 = vperm.xlu1 %3110, %v448_v3  }
  0x32   : > { %3111 = vset.pattern.permute.xlu0 %v3240_v9 }
  0x33   : > { %1248 = vperm.xlu0 %3111, %v449_v4   ;;  %3112 = vset.pattern.permute.xlu1 %v3241_v10 }
  0x34   : > { %1494 = vperm.xlu1 %3112, %v448_v3  }
  0x37   : > { %3113 = vset.pattern.permute.xlu0 %v3242_v11 }
  0x38   : > { %1744 = vperm.xlu0 %3113, %v448_v3   ;;  %1498 = vperm.xlu1 %3112, %v449_v4  }
  0x3c   : > { %3116 = vset.pattern.permute.xlu0 %v3243_v12  ;;  %3114 = vset.pattern.permute.xlu1 %v3242_v11 }
  0x3d   : > { %1998 = vperm.xlu0 %3116, %v449_v4   ;;  %1748 = vperm.xlu1 %3114, %v449_v4  }
  0x41   : > { %3118 = vset.pattern.permute.xlu0 %v3244_v13  ;;  %3115 = vset.pattern.permute.xlu1 %v3243_v12 }
  0x42   : > { %1994 = vperm.xlu1 %3115, %v448_v3  }
  0x46   : > { %3117 = vset.pattern.permute.xlu1 %v3244_v13 }
  0x47   : > { %2244 = vperm.xlu1 %3117, %v448_v3  }
  0x4b   : > { %2248 = vperm.xlu1 %3117, %v449_v4  }
  0x94   : > { %v3394_v14 = vpop.permute.xlu1 %489 }
  0x98   : > { %v3398_v16 = vpop.permute.xlu1 %494 }
  0x9f   : > { %v463_v17 = vpop.permute.xlu0 %462  ;;  %v749_v21 = vpop.permute.xlu1 %748 }
  0xa0   : > { %v470_v18 = vsub.f32 %v3396_v15, %v463_v17  ;;  %v752_v24 = vsub.f32 %v3401_v19, %v749_v21 }
  0xa2   : > { %v472_v22 = vmul.f32 %v470_v18, %v470_v18  ;;  %v754_v26 = vmul.f32 %v752_v24, %v752_v24 }
  0xa3   : > { %v468_v20 = vpop.permute.xlu0 %467 }
  0xa4   : > { %v471_v23 = vsub.f32 %v3401_v19, %v468_v20  ;;  %v475_v27 = vsel %vm474_vm1, %v472_v22, 0.0  ;;  %v3407_v30 = vpop.permute.xlu1 %587  ;;  %v756_v35 = vsel %vm474_vm1, %v754_v26, 0.0 }
  0xa6   : > { %v473_v25 = vmul.f32 %v471_v23, %v471_v23 }
  0xa8   : > { %v476_v28 = vsel %vm474_vm1, %v473_v25, 0.0  ;;  %v2976_v29 = vpack.c.bf16 %v473_v25, %v472_v22  ;;  %v745_v31 = vpop.permute.xlu0 %744 }
  0xa9   : > { %v477_v32 = vadd.f32 %v476_v28, %v475_v27  ;;  %v751_v33 = vsub.f32 %v3396_v15, %v745_v31  ;;  %v999_v39 = vpop.permute.xlu1 %998 }
  0xaa   : > { %2977 = vmatprep.subr.bf16.mxu0 %v2976_v29  ;;  %v1002_v43 = vsub.f32 %v3401_v19, %v999_v39 }
  0xab   : > { %v478_v34 = vrot.slane %v477_v32, 4  ;;  %2979 = vmatpush3.bf16.msra.mxu0 %v2976_v29  ;;  %v753_v37 = vmul.f32 %v751_v33, %v751_v33 }
  0xac   : > { %v1004_v47 = vmul.f32 %v1002_v43, %v1002_v43 }
  0xad   : > { %v479_v38 = vadd.f32 %v478_v34, %v477_v32  ;;  %v755_v40 = vsel %vm474_vm1, %v753_v37, 0.0  ;;  %v3417_v41 = vpack.c.bf16 %v754_v26, %v753_v37  ;;  %v995_v42 = vpop.permute.xlu0 %994 }
  0xae   : > { %2829 = vmatmul.mubr.msk.f32.vlgmr.msra.gmra.mrb[0].mxu0 %vm497_vm0, %v3414_v36  ;;  %v757_v44 = vadd.f32 %v756_v35, %v755_v40  ;;  %v1001_v45 = vsub.f32 %v3396_v15, %v995_v42  ;;  %v1006_v51 = vsel %vm474_vm1, %v1004_v47, 0.0  ;;  %v1245_v52 = vpop.permute.xlu1 %1244 }
  0xaf   : > { %v480_v46 = vrot.slane %v479_v38, 2  ;;  %v1251_v58 = vsub.f32 %v3396_v15, %v1245_v52 }
  0xb0   : > { %v758_v48 = vrot.slane %v757_v44, 4  ;;  %v1003_v49 = vmul.f32 %v1001_v45, %v1001_v45 }
  0xb1   : > { %v481_v50 = vadd.f32 %v480_v46, %v479_v38  ;;  %v1253_v63 = vmul.f32 %v1251_v58, %v1251_v58 }
  0xb2   : > { %v759_v53 = vadd.f32 %v758_v48, %v757_v44  ;;  %v1005_v54 = vsel %vm474_vm1, %v1003_v49, 0.0  ;;  %v3425_v55 = vpack.c.bf16 %v1004_v47, %v1003_v49  ;;  %v1249_v56 = vpop.permute.xlu0 %1248 }
  0xb3   : > { %v482_v57 = vrot.slane %v481_v50, 1  ;;  %v1007_v59 = vadd.f32 %v1006_v51, %v1005_v54  ;;  %v1252_v60 = vsub.f32 %v3401_v19, %v1249_v56  ;;  %v1255_v4 = vsel %vm474_vm1, %v1253_v63, 0.0  ;;  %v1495_v5 = vpop.permute.xlu1 %1494 }
  0xb4   : > { %v760_v61 = vrot.slane %v759_v53, 2  ;;  %v1501_v10 = vsub.f32 %v3396_v15, %v1495_v5 }
  0xb5   : > { %v483_v62 = vadd.f32 %v482_v57, %v481_v50  ;;  %v1008_v0 = vrot.slane %v1007_v59, 4  ;;  %v1254_v1 = vmul.f32 %v1252_v60, %v1252_v60 }
  0xb6   : > { %v761_v2 = vadd.f32 %v760_v61, %v759_v53  ;;  %v1503_v18 = vmul.f32 %v1501_v10, %v1501_v10 }
  0xb7   : > { %v484_v3 = vsub.f32 0.0, %v483_v62  ;;  %v1009_v6 = vadd.f32 %v1008_v0, %v1007_v59  ;;  %v1256_v8 = vsel %vm474_vm1, %v1254_v1, 0.0  ;;  %v1745_v9 = vpop.permute.xlu0 %1744  ;;  %v3432_v13 = vpack.c.bf16 %v1254_v1, %v1253_v63  ;;  %v1499_v22 = vpop.permute.xlu1 %1498 }
  0xb8   : > { %v762_v11 = vrot.slane %v761_v2, 1  ;;  %v1257_v12 = vadd.f32 %v1256_v8, %v1255_v4  ;;  %v1751_v24 = vsub.f32 %v3396_v15, %v1745_v9  ;;  %v1502_v25 = vsub.f32 %v3401_v19, %v1499_v22 }
  0xb9   : > { %486 = vst.msk [vmem:[#allocation3] sm:$0x1] %vm485_vm2, %v484_v3  ;;  %v1010_v17 = vrot.slane %v1009_v6, 2  ;;  %v1505_v31 = vsel %vm474_vm1, %v1503_v18, 0.0 }
  0xba   : > { %v763_v20 = vadd.f32 %v762_v11, %v761_v2  ;;  %v1258_v21 = vrot.slane %v1257_v12, 4  ;;  %v1504_v32 = vmul.f32 %v1502_v25, %v1502_v25  ;;  %v1753_v35 = vmul.f32 %v1751_v24, %v1751_v24 }
  0xbb   : > { %v1011_v23 = vadd.f32 %v1010_v17, %v1009_v6 }
  0xbc   : > { %v764_v26 = vsub.f32 0.0, %v763_v20  ;;  %v1259_v27 = vadd.f32 %v1258_v21, %v1257_v12  ;;  %v1999_v29 = vpop.permute.xlu0 %1998  ;;  %v1506_v37 = vsel %vm474_vm1, %v1504_v32, 0.0  ;;  %v3440_v38 = vpack.c.bf16 %v1504_v32, %v1503_v18  ;;  %v1749_v39 = vpop.permute.xlu1 %1748 }
  0xbd   : > { %v1012_v28 = vrot.slane %v1011_v23, 1  ;;  %v2002_v42 = vsub.f32 %v3401_v19, %v1999_v29  ;;  %v1507_v43 = vadd.f32 %v1506_v37, %v1505_v31  ;;  %v1752_v44 = vsub.f32 %v3401_v19, %v1749_v39 }
  0xbe   : > { %765 = vst.msk [vmem:[#allocation3 + $0x1] sm:$0x1] %vm485_vm2, %v764_v26  ;;  %v1260_v33 = vrot.slane %v1259_v27, 2  ;;  %v1755_v49 = vsel %vm474_vm1, %v1753_v35, 0.0 }
  0xbf   : > { %v1013_v34 = vadd.f32 %v1012_v28, %v1011_v23  ;;  %v1508_v47 = vrot.slane %v1507_v43, 4  ;;  %v1754_v48 = vmul.f32 %v1752_v44, %v1752_v44  ;;  %v2004_v51 = vmul.f32 %v2002_v42, %v2002_v42 }
  0xc0   : > { %v1261_v40 = vadd.f32 %v1260_v33, %v1259_v27 }
  0xc1   : > { %v1014_v45 = vsub.f32 0.0, %v1013_v34  ;;  %v1509_v52 = vadd.f32 %v1508_v47, %v1507_v43  ;;  %v1756_v53 = vsel %vm474_vm1, %v1754_v48, 0.0  ;;  %v1995_v54 = vpop.permute.xlu1 %1994  ;;  %v3447_v56 = vpack.c.bf16 %v1754_v48, %v1753_v35 }
  0xc2   : > { %v1262_v46 = vrot.slane %v1261_v40, 1  ;;  %v2001_v57 = vsub.f32 %v3396_v15, %v1995_v54  ;;  %v1757_v59 = vadd.f32 %v1756_v53, %v1755_v49  ;;  %v2006_v63 = vsel %vm474_vm1, %v2004_v51, 0.0 }
  0xc3   : > { %1015 = vst.msk [vmem:[#allocation3 + $0x2] sm:$0x1] %vm485_vm2, %v1014_v45  ;;  %v1510_v60 = vrot.slane %v1509_v52, 2  ;;  %v3247_v47 = vmov 0.0  }
  0xc4   : > { %v1263_v50 = vadd.f32 %v1262_v46, %v1261_v40  ;;  %v2003_v61 = vmul.f32 %v2001_v57, %v2001_v57  ;;  %v1758_v62 = vrot.slane %v1757_v59, 4  ;;  %v3245_v46 = vmov 0.0|0.0   ;;  %2835 = vmatprep.mubr.msk.f32.mxu1 %vm3246_vm3, %v3247_v47  ;;  %2838 = vmatprep.subr.mxu0 %v3247_v47 }
  0xc5   : > { %v1511_v0 = vadd.f32 %v1510_v60, %v1509_v52  ;;  %2980 = vmatprep.subr.bf16.mxu1 %v3245_v46  ;;  %2840 = vmatprep.mubr.msk.f32.mxu0 %vm3246_vm3, %v3247_v47 }
  0xc6   : > { %v1264_v58 = vsub.f32 0.0, %v1263_v50  ;;  %v2005_v1 = vsel %vm474_vm1, %v2003_v61, 0.0  ;;  %v2245_v2 = vpop.permute.xlu1 %2244  ;;  %v1759_v3 = vadd.f32 %v1758_v62, %v1757_v59  ;;  %v3453_v4 = vpack.c.bf16 %v2004_v51, %v2003_v61  ;;  %v3486_v59 = vld [vmem:[%s3746_s5] sm:$0xff] }
  0xc7   : > { %v1512_v5 = vrot.slane %v1511_v0, 1  ;;  %v2251_v6 = vsub.f32 %v3396_v15, %v2245_v2  ;;  %v2007_v8 = vadd.f32 %v2006_v63, %v2005_v1 }
  0xc8   : > { %1265 = vst.msk [vmem:[#allocation3 + $0x3] sm:$0x1] %vm485_vm2, %v1264_v58  ;;  %v1760_v9 = vrot.slane %v1759_v3, 2 }
  0xc9   : > { %v1513_v10 = vadd.f32 %v1512_v5, %v1511_v0  ;;  %v2253_v11 = vmul.f32 %v2251_v6, %v2251_v6  ;;  %v2008_v12 = vrot.slane %v2007_v8, 4 }
  0xca   : > { %v1761_v17 = vadd.f32 %v1760_v9, %v1759_v3  ;;  %v2249_v18 = vpop.permute.xlu1 %2248 }
  0xcb   : > { %v1514_v20 = vsub.f32 0.0, %v1513_v10  ;;  %v2252_v21 = vsub.f32 %v3401_v19, %v2249_v18  ;;  %v2009_v22 = vadd.f32 %v2008_v12, %v2007_v8  ;;  %v2255_v24 = vsel %vm474_vm1, %v2253_v11, 0.0 }
  0xcc   : > { %v1762_v23 = vrot.slane %v1761_v17, 1  ;;  %v3523_v12 = vstv %s457_s14  ;;  %s3664_s14 = scalar_lea.hbm %s3751_s10, %s3753_s30 }
  0xcd   : > { %1515 = vst.msk [vmem:[#allocation3 + $0x4] sm:$0x1] %vm485_vm2, %v1514_v20  ;;  %v2254_v25 = vmul.f32 %v2252_v21, %v2252_v21  ;;  %v2010_v26 = vrot.slane %v2009_v22, 2 }
  0xce   : > { %v1763_v27 = vadd.f32 %v1762_v23, %v1761_v17 }
  0xcf   : > { %v2256_v15 = vsel %vm474_vm1, %v2254_v25, 0.0  ;;  %v3460_v28 = vpack.c.bf16 %v2254_v25, %v2253_v11  ;;  %v2011_v29 = vadd.f32 %v2010_v26, %v2009_v22 }
  0xd0   : > { %v1764_v31 = vsub.f32 0.0, %v1763_v27  ;;  %v2257_v32 = vadd.f32 %v2256_v15, %v2255_v24 }
  0xd1   : > { %v2012_v33 = vrot.slane %v2011_v29, 1 }
  0xd2   : > { %1765 = vst.msk [vmem:[#allocation3 + $0x5] sm:$0x1] %vm485_vm2, %v1764_v31  ;;  %v2258_v19 = vrot.slane %v2257_v32, 4 }
  0xd3   : > { %v2013_v34 = vadd.f32 %v2012_v33, %v2011_v29 }
  0xd4   : > { %v2259_v35 = vadd.f32 %v2258_v19, %v2257_v32 }
  0xd5   : > { %v2014_v37 = vsub.f32 0.0, %v2013_v34 }
  0xd6   : > { %v2260_v39 = vrot.slane %v2259_v35, 2 }
  0xd7   : > { %2015 = vst.msk [vmem:[#allocation3 + $0x6] sm:$0x1] %vm485_vm2, %v2014_v37 }
  0xd8   : > { %v2261_v40 = vadd.f32 %v2260_v39, %v2259_v35 }
  0xda   : > { %v2262_v42 = vrot.slane %v2261_v40, 1 }
  0xdc   : > { %v2263_v43 = vadd.f32 %v2262_v42, %v2261_v40 }
  0xde   : > { %v2264_v44 = vsub.f32 0.0, %v2263_v43 }
  0xe0   : > { %2265 = vst.msk [vmem:[#allocation3 + $0x7] sm:$0x1] %vm485_vm2, %v2264_v44 }
  0xe7   : > { %v2491_v45 = vld [vmem:[#allocation3] sm:$0xff] }
  0xe8   : > { %2492 = vst.msk [vmem:[%s3471_s25] sm:$0xff] %vm474_vm1, %v2491_v45 }
 0x181   : > { %v2830_v48 = vpop.f32.mrb[0].mxu0 }
 0x182   : > { %v576_v49 = vadd.f32 %v2830_v48, %v3398_v16  ;;  %v570_v50 = vpop.f32.mrb[1].mxu0 }
 0x183   : > { %v571_v51 = vadd.f32 %v570_v50, %v3394_v14 }
 0x184   : > { %v582_v52 = vmul.f32 0.01, %v576_v49  ;;  %vm580_vm4 = vcmp.gt.f32.partialorder %v576_v49, 0.0 }
 0x185   : > { %v581_v53 = vmul.f32 0.01, %v571_v51  ;;  %vm579_vm5 = vcmp.gt.f32.partialorder %v571_v51, 0.0 }
 0x186   : > { %v584_v54 = vsel %vm580_vm4, %v576_v49, %v582_v52 }
 0x187   : > { %v583_v57 = vsel %vm579_vm5, %v571_v51, %v581_v53 }
 0x188   : > { %v2981_v58 = vpack.c.bf16 %v584_v54, %v583_v57 }
 0x18a   : > { %2982 = vmatpush3.bf16.msra.mxu1 %v2981_v58 }
 0x18b   : > { %2984 = vmatprep.subr.bf16.mxu1 %v3417_v41 }
 0x18d   : > { %2836 = vmatmul.mubr.msk.f32.vlgmr.msra.gmra.mrb[0].mxu1 %vm497_vm0, %v3486_v59 }
 0x18e   : > { %2986 = vmatpush3.bf16.msra.mxu1 %v3417_v41  ;;  %2847 = vmatprep.mubr.msk.f32.mxu1 %vm497_vm0, %v3385_v7  ;;  %v3503_v41 = vld [vmem:[%s3748_s7] sm:$0x1] }
 0x18f   : > { %2857 = vmatprep.subr.mxu1 %v3247_v47 }
 0x191   : > { %2848 = vmatmul.mubr.msk.f32.vlgmr.msra.gmra.mrb[2].mxu1 %vm497_vm0, %v3414_v36 }
 0x192   : > { %2859 = vmatprep.mubr.msk.f32.mxu1 %vm3246_vm3, %v3247_v47 }
 0x260   : > { %v659_v60 = vpop.f32.mrb[0].mxu1 }
 0x261   : > { %v660_v61 = vadd.f32 %v659_v60, %v3407_v30  ;;  %v2837_v62 = vpop.f32.mrb[1].mxu1 }
 0x263   : > { %vm663_vm6 = vcmp.gt.f32.partialorder %v660_v61, 0.0  ;;  %v664_v63 = vmul.f32 0.01, %v660_v61 }
 0x264   : > { %v2849_v0 = vpop.f32.mrb[2].mxu1 }
 0x265   : > { %v838_v1 = vadd.f32 %v2849_v0, %v3398_v16  ;;  %v832_v2 = vpop.f32.mrb[3].mxu1  ;;  %v665_v3 = vsel %vm663_vm6, %v660_v61, %v664_v63 }
 0x266   : > { %v833_v5 = vadd.f32 %v832_v2, %v3394_v14  ;;  %2839 = vmatpush3.msra.mxu0 %v665_v3 }
 0x267   : > { %vm842_vm7 = vcmp.gt.f32.partialorder %v838_v1, 0.0  ;;  %v844_v6 = vmul.f32 0.01, %v838_v1  ;;  %2841 = vmatmul.mubr.msk.f32.vlgmr.msra.gmra.mrb[2].mxu0 %vm474_vm1, %v3503_v41  ;;  %2987 = vmatprep.subr.bf16.mxu0 %v3245_v46 }
 0x268   : > { %vm841_vm8 = vcmp.gt.f32.partialorder %v833_v5, 0.0  ;;  %v843_v8 = vmul.f32 0.01, %v833_v5  ;;  %2854 = vmatprep.mubr.msk.f32.mxu0 %vm3246_vm3, %v3247_v47 }
 0x269   : > { %v846_v9 = vsel %vm842_vm7, %v838_v1, %v844_v6 }
 0x26a   : > { %v845_v10 = vsel %vm841_vm8, %v833_v5, %v843_v8 }
 0x26b   : > { %v2988_v11 = vpack.c.bf16 %v846_v9, %v845_v10 }
 0x26d   : > { %2989 = vmatpush3.bf16.msra.mxu0 %v2988_v11 }
 0x26e   : > { %2991 = vmatprep.subr.bf16.mxu0 %v3425_v55 }
 0x270   : > { %2855 = vmatmul.mubr.msk.f32.vlgmr.msra.gmra.mrb[4].mxu0 %vm497_vm0, %v3486_v59 }
 0x271   : > { %2993 = vmatpush3.bf16.msra.mxu0 %v3425_v55  ;;  %2866 = vmatprep.mubr.msk.f32.mxu0 %vm497_vm0, %v3385_v7 }
 0x272   : > { %2876 = vmatprep.subr.mxu0 %v3247_v47 }
 0x274   : > { %2867 = vmatmul.mubr.msk.f32.vlgmr.msra.gmra.mrb[6].mxu0 %vm497_vm0, %v3414_v36 }
 0x275   : > { %2878 = vmatprep.mubr.msk.f32.mxu0 %vm3246_vm3, %v3247_v47 }
 0x33a   : > { %v736_v17 = vpop.f32.mrb[2].mxu0 }
 0x33b   : > { %v737_v18 = vadd.f32 %v736_v17, %v3523_v12  ;;  %v2842_v20 = vpop.f32.mrb[3].mxu0 }
 0x33d   : > { %740 = vst.msk [vmem:[#allocation2] sm:$0x1] %vm485_vm2, %v737_v18 }
 0x343   : > { %v913_v55 = vpop.f32.mrb[4].mxu0 }
 0x344   : > { %v914_v21 = vadd.f32 %v913_v55, %v3407_v30  ;;  %v2856_v22 = vpop.f32.mrb[5].mxu0 }
 0x346   : > { %vm917_vm9 = vcmp.gt.f32.partialorder %v914_v21, 0.0  ;;  %v918_v23 = vmul.f32 0.01, %v914_v21 }
 0x347   : > { %v2868_v24 = vpop.f32.mrb[6].mxu0 }
 0x348   : > { %v1088_v25 = vadd.f32 %v2868_v24, %v3398_v16  ;;  %v1082_v26 = vpop.f32.mrb[7].mxu0  ;;  %v919_v27 = vsel %vm917_vm9, %v914_v21, %v918_v23 }
 0x349   : > { %v1083_v15 = vadd.f32 %v1082_v26, %v3394_v14  ;;  %2858 = vmatpush3.msra.mxu1 %v919_v27 }
 0x34a   : > { %vm1092_vm10 = vcmp.gt.f32.partialorder %v1088_v25, 0.0  ;;  %v1094_v29 = vmul.f32 0.01, %v1088_v25  ;;  %2860 = vmatmul.mubr.msk.f32.vlgmr.msra.gmra.mrb[4].mxu1 %vm474_vm1, %v3503_v41  ;;  %2994 = vmatprep.subr.bf16.mxu1 %v3245_v46 }
 0x34b   : > { %vm1091_vm11 = vcmp.gt.f32.partialorder %v1083_v15, 0.0  ;;  %v1093_v31 = vmul.f32 0.01, %v1083_v15  ;;  %2873 = vmatprep.mubr.msk.f32.mxu1 %vm3246_vm3, %v3247_v47 }
 0x34c   : > { %v1096_v32 = vsel %vm1092_vm10, %v1088_v25, %v1094_v29 }
 0x34d   : > { %v1095_v33 = vsel %vm1091_vm11, %v1083_v15, %v1093_v31 }
 0x34e   : > { %v2995_v19 = vpack.c.bf16 %v1096_v32, %v1095_v33 }
 0x350   : > { %2996 = vmatpush3.bf16.msra.mxu1 %v2995_v19 }
 0x351   : > { %2998 = vmatprep.subr.bf16.mxu1 %v3432_v13 }
 0x353   : > { %2874 = vmatmul.mubr.msk.f32.vlgmr.msra.gmra.mrb[6].mxu1 %vm497_vm0, %v3486_v59 }
 0x354   : > { %3000 = vmatpush3.bf16.msra.mxu1 %v3432_v13  ;;  %2885 = vmatprep.mubr.msk.f32.mxu1 %vm497_vm0, %v3385_v7 }
 0x355   : > { %2895 = vmatprep.subr.mxu1 %v3247_v47 }
 0x357   : > { %2886 = vmatmul.mubr.msk.f32.vlgmr.msra.gmra.mrb[8].mxu1 %vm497_vm0, %v3414_v36 }
 0x358   : > { %2897 = vmatprep.mubr.msk.f32.mxu1 %vm3246_vm3, %v3247_v47 }
 0x41d   : > { %v986_v34 = vpop.f32.mrb[4].mxu1 }
 0x41e   : > { %v987_v35 = vadd.f32 %v986_v34, %v3523_v12  ;;  %v2861_v37 = vpop.f32.mrb[5].mxu1 }
 0x420   : > { %990 = vst.msk [vmem:[#allocation2 + $0x1] sm:$0x1] %vm485_vm2, %v987_v35 }
 0x426   : > { %v1163_v39 = vpop.f32.mrb[6].mxu1 }
 0x427   : > { %v1164_v13 = vadd.f32 %v1163_v39, %v3407_v30  ;;  %v2875_v40 = vpop.f32.mrb[7].mxu1 }
 0x429   : > { %vm1167_vm12 = vcmp.gt.f32.partialorder %v1164_v13, 0.0  ;;  %v1168_v42 = vmul.f32 0.01, %v1164_v13 }
 0x42a   : > { %v2887_v43 = vpop.f32.mrb[8].mxu1 }
 0x42b   : > { %v1338_v44 = vadd.f32 %v2887_v43, %v3398_v16  ;;  %v1332_v45 = vpop.f32.mrb[9].mxu1  ;;  %v1169_v48 = vsel %vm1167_vm12, %v1164_v13, %v1168_v42 }
 0x42c   : > { %v1333_v49 = vadd.f32 %v1332_v45, %v3394_v14  ;;  %2877 = vmatpush3.msra.mxu0 %v1169_v48 }
 0x42d   : > { %vm1342_vm13 = vcmp.gt.f32.partialorder %v1338_v44, 0.0  ;;  %v1344_v50 = vmul.f32 0.01, %v1338_v44  ;;  %2879 = vmatmul.mubr.msk.f32.vlgmr.msra.gmra.mrb[8].mxu0 %vm474_vm1, %v3503_v41  ;;  %3001 = vmatprep.subr.bf16.mxu0 %v3245_v46 }
 0x42e   : > { %vm1341_vm14 = vcmp.gt.f32.partialorder %v1333_v49, 0.0  ;;  %v1343_v51 = vmul.f32 0.01, %v1333_v49  ;;  %2892 = vmatprep.mubr.msk.f32.mxu0 %vm3246_vm3, %v3247_v47 }
 0x42f   : > { %v1346_v52 = vsel %vm1342_vm13, %v1338_v44, %v1344_v50 }
 0x430   : > { %v1345_v53 = vsel %vm1341_vm14, %v1333_v49, %v1343_v51 }
 0x431   : > { %v3002_v54 = vpack.c.bf16 %v1346_v52, %v1345_v53 }
 0x433   : > { %3003 = vmatpush3.bf16.msra.mxu0 %v3002_v54 }
 0x434   : > { %3005 = vmatprep.subr.bf16.mxu0 %v3440_v38 }
 0x436   : > { %2893 = vmatmul.mubr.msk.f32.vlgmr.msra.gmra.mrb[10].mxu0 %vm497_vm0, %v3486_v59 }
 0x437   : > { %3007 = vmatpush3.bf16.msra.mxu0 %v3440_v38  ;;  %2904 = vmatprep.mubr.msk.f32.mxu0 %vm497_vm0, %v3385_v7 }
 0x438   : > { %2914 = vmatprep.subr.mxu0 %v3247_v47 }
 0x43a   : > { %2905 = vmatmul.mubr.msk.f32.vlgmr.msra.gmra.mrb[12].mxu0 %vm497_vm0, %v3414_v36 }
 0x43b   : > { %2916 = vmatprep.mubr.msk.f32.mxu0 %vm3246_vm3, %v3247_v47 }
 0x500   : > { %v1236_v57 = vpop.f32.mrb[8].mxu0 }
 0x501   : > { %v1237_v58 = vadd.f32 %v1236_v57, %v3523_v12  ;;  %v2880_v60 = vpop.f32.mrb[9].mxu0 }
 0x503   : > { %1240 = vst.msk [vmem:[#allocation2 + $0x2] sm:$0x1] %vm485_vm2, %v1237_v58 }
 0x509   : > { %v1413_v61 = vpop.f32.mrb[10].mxu0 }
 0x50a   : > { %v1414_v38 = vadd.f32 %v1413_v61, %v3407_v30  ;;  %v2894_v62 = vpop.f32.mrb[11].mxu0 }
 0x50c   : > { %vm1417_vm15 = vcmp.gt.f32.partialorder %v1414_v38, 0.0  ;;  %v1418_v63 = vmul.f32 0.01, %v1414_v38 }
 0x50d   : > { %v2906_v0 = vpop.f32.mrb[12].mxu0 }
 0x50e   : > { %v1588_v1 = vadd.f32 %v2906_v0, %v3398_v16  ;;  %v1582_v2 = vpop.f32.mrb[13].mxu0  ;;  %v1419_v3 = vsel %vm1417_vm15, %v1414_v38, %v1418_v63 }
 0x50f   : > { %v1583_v5 = vadd.f32 %v1582_v2, %v3394_v14  ;;  %2896 = vmatpush3.msra.mxu1 %v1419_v3 }
 0x510   : > { %vm1592_vm4 = vcmp.gt.f32.partialorder %v1588_v1, 0.0  ;;  %v1594_v6 = vmul.f32 0.01, %v1588_v1  ;;  %2898 = vmatmul.mubr.msk.f32.vlgmr.msra.gmra.mrb[10].mxu1 %vm474_vm1, %v3503_v41  ;;  %3008 = vmatprep.subr.bf16.mxu1 %v3245_v46 }
 0x511   : > { %vm1591_vm5 = vcmp.gt.f32.partialorder %v1583_v5, 0.0  ;;  %v1593_v8 = vmul.f32 0.01, %v1583_v5  ;;  %2911 = vmatprep.mubr.msk.f32.mxu1 %vm3246_vm3, %v3247_v47 }
 0x512   : > { %v1596_v9 = vsel %vm1592_vm4, %v1588_v1, %v1594_v6 }
 0x513   : > { %v1595_v10 = vsel %vm1591_vm5, %v1583_v5, %v1593_v8 }
 0x514   : > { %v3009_v11 = vpack.c.bf16 %v1596_v9, %v1595_v10 }
 0x516   : > { %3010 = vmatpush3.bf16.msra.mxu1 %v3009_v11  ;;  %v2498_v11 = vlaneseq }
 0x517   : > { %3012 = vmatprep.subr.bf16.mxu1 %v3447_v56 }
 0x519   : > { %2912 = vmatmul.mubr.msk.f32.vlgmr.msra.gmra.mrb[12].mxu1 %vm497_vm0, %v3486_v59 }
 0x51a   : > { %3014 = vmatpush3.bf16.msra.mxu1 %v3447_v56  ;;  %2923 = vmatprep.mubr.msk.f32.mxu1 %vm497_vm0, %v3385_v7 }
 0x51b   : > { %2933 = vmatprep.subr.mxu1 %v3247_v47 }
 0x51d   : > { %2924 = vmatmul.mubr.msk.f32.vlgmr.msra.gmra.mrb[14].mxu1 %vm497_vm0, %v3414_v36 }
 0x51e   : > { %2935 = vmatprep.mubr.msk.f32.mxu1 %vm3246_vm3, %v3247_v47 }
 0x5e3   : > { %v1486_v17 = vpop.f32.mrb[10].mxu1 }
 0x5e4   : > { %v1487_v18 = vadd.f32 %v1486_v17, %v3523_v12  ;;  %v2899_v20 = vpop.f32.mrb[11].mxu1  ;;  %v2504_v17 = vand.u32 127, %v2498_v11 }
 0x5e6   : > { %1490 = vst.msk [vmem:[#allocation2 + $0x3] sm:$0x1] %vm485_vm2, %v1487_v18  ;;  %v2506_v18 = vld [vmem:[%s447_s29] sm:$0xff]  ;;  %s3248_s29 = smov [#allocation7]  }
 0x5e7   : > { %s3129_s23 = sshll.u32 %s3248_s29, 4  ;;  %s3130_s23 = int_to_ptr.vmem [resolvable:$false] %s3129_s23 }
 0x5e8   : > { %s3131_s0 = scalar_lea.vmem %s3130_s23, 256  ;;  %p3132_p1 = scmp.lt.s32.totalorder %s2564_s13, %s3130_s23 }
 0x5e9   : > { %p3133_p2 = scmp.lt.s32.totalorder %s3131_s0, %s3125_s28 }
 0x5eb   : > { %p3134_p3 = por %p3133_p2, %p3132_p1 }
 0x5ec   : > { %v1663_v55 = vpop.f32.mrb[12].mxu1 }
 0x5ed   : > { %v1664_v56 = vadd.f32 %v1663_v55, %v3407_v30  ;;  %v2913_v21 = vpop.f32.mrb[13].mxu1  ;;  %p3135_p5 = pnand %p3134_p3, %p3128_p0 }
 0x5ef   : > { %vm1667_vm6 = vcmp.gt.f32.partialorder %v1664_v56, 0.0  ;;  %v1668_v22 = vmul.f32 0.01, %v1664_v56 }
 0x5f0   : > { %v2925_v23 = vpop.f32.mrb[14].mxu1 }
 0x5f1   : > { %v1838_v24 = vadd.f32 %v2925_v23, %v3398_v16  ;;  %v1832_v25 = vpop.f32.mrb[15].mxu1  ;;  %v1669_v26 = vsel %vm1667_vm6, %v1664_v56, %v1668_v22 }
 0x5f2   : > { %v1833_v27 = vadd.f32 %v1832_v25, %v3394_v14  ;;  %2915 = vmatpush3.msra.mxu0 %v1669_v26 }
 0x5f3   : > { %vm1842_vm7 = vcmp.gt.f32.partialorder %v1838_v24, 0.0  ;;  %v1844_v15 = vmul.f32 0.01, %v1838_v24  ;;  %2917 = vmatmul.mubr.msk.f32.vlgmr.msra.gmra.mrb[14].mxu0 %vm474_vm1, %v3503_v41  ;;  %3015 = vmatprep.subr.bf16.mxu0 %v3245_v46 }
 0x5f4   : > { %vm1841_vm8 = vcmp.gt.f32.partialorder %v1833_v27, 0.0  ;;  %v1843_v29 = vmul.f32 0.01, %v1833_v27  ;;  %2930 = vmatprep.mubr.msk.f32.mxu0 %vm3246_vm3, %v3247_v47 }
 0x5f5   : > { %v1846_v31 = vsel %vm1842_vm7, %v1838_v24, %v1844_v15 }
 0x5f6   : > { %v1845_v32 = vsel %vm1841_vm8, %v1833_v27, %v1843_v29 }
 0x5f7   : > { %v3016_v33 = vpack.c.bf16 %v1846_v31, %v1845_v32 }
 0x5f9   : > { %3017 = vmatpush3.bf16.msra.mxu0 %v3016_v33 }
 0x5fa   : > { %3019 = vmatprep.subr.bf16.mxu0 %v3453_v4 }
 0x5fc   : > { %2931 = vmatmul.mubr.msk.f32.vlgmr.msra.gmra.mrb[16].mxu0 %vm497_vm0, %v3486_v59 }
 0x5fd   : > { %3021 = vmatpush3.bf16.msra.mxu0 %v3453_v4  ;;  %2942 = vmatprep.mubr.msk.f32.mxu0 %vm497_vm0, %v3385_v7 }
 0x5fe   : > { %2952 = vmatprep.subr.mxu0 %v3247_v47 }
 0x600   : > { %2943 = vmatmul.mubr.msk.f32.vlgmr.msra.gmra.mrb[18].mxu0 %vm497_vm0, %v3414_v36 }
 0x601   : > { %2954 = vmatprep.mubr.msk.f32.mxu0 %vm3246_vm3, %v3247_v47 }
 0x6c6   : > { %v1736_v19 = vpop.f32.mrb[14].mxu0 }
 0x6c7   : > { %v1737_v34 = vadd.f32 %v1736_v19, %v3523_v12  ;;  %v2918_v35 = vpop.f32.mrb[15].mxu0 }
 0x6c9   : > { %1740 = vst.msk [vmem:[#allocation2 + $0x4] sm:$0x1] %vm485_vm2, %v1737_v34 }
 0x6cf   : > { %v1913_v37 = vpop.f32.mrb[16].mxu0 }
 0x6d0   : > { %v1914_v4 = vadd.f32 %v1913_v37, %v3407_v30  ;;  %v2932_v39 = vpop.f32.mrb[17].mxu0 }
 0x6d2   : > { %vm1917_vm9 = vcmp.gt.f32.partialorder %v1914_v4, 0.0  ;;  %v1918_v13 = vmul.f32 0.01, %v1914_v4 }
 0x6d3   : > { %v2944_v40 = vpop.f32.mrb[18].mxu0 }
 0x6d4   : > { %v2088_v42 = vadd.f32 %v2944_v40, %v3398_v16  ;;  %v2082_v43 = vpop.f32.mrb[19].mxu0  ;;  %v1919_v44 = vsel %vm1917_vm9, %v1914_v4, %v1918_v13 }
 0x6d5   : > { %v2083_v45 = vadd.f32 %v2082_v43, %v3394_v14  ;;  %2934 = vmatpush3.msra.mxu1 %v1919_v44 }
 0x6d6   : > { %vm2092_vm10 = vcmp.gt.f32.partialorder %v2088_v42, 0.0  ;;  %v2094_v48 = vmul.f32 0.01, %v2088_v42  ;;  %2936 = vmatmul.mubr.msk.f32.vlgmr.msra.gmra.mrb[16].mxu1 %vm474_vm1, %v3503_v41  ;;  %3022 = vmatprep.subr.bf16.mxu1 %v3245_v46 }
 0x6d7   : > { %vm2091_vm11 = vcmp.gt.f32.partialorder %v2083_v45, 0.0  ;;  %v2093_v49 = vmul.f32 0.01, %v2083_v45  ;;  %2949 = vmatprep.mubr.msk.f32.mxu1 %vm3246_vm3, %v3247_v47 }
 0x6d8   : > { %v2096_v50 = vsel %vm2092_vm10, %v2088_v42, %v2094_v48 }
 0x6d9   : > { %v2095_v51 = vsel %vm2091_vm11, %v2083_v45, %v2093_v49 }
 0x6da   : > { %v3023_v52 = vpack.c.bf16 %v2096_v50, %v2095_v51 }
 0x6dc   : > { %3024 = vmatpush3.bf16.msra.mxu1 %v3023_v52 }
 0x6dd   : > { %3026 = vmatprep.subr.bf16.mxu1 %v3460_v28 }
 0x6df   : > { %2950 = vmatmul.mubr.msk.f32.vlgmr.msra.gmra.mrb[18].mxu1 %vm497_vm0, %v3486_v59 }
 0x6e0   : > { %3028 = vmatpush3.bf16.msra.mxu1 %v3460_v28  ;;  %2961 = vmatprep.mubr.msk.f32.mxu1 %vm497_vm0, %v3385_v7 }
 0x6e1   : > { %2971 = vmatprep.subr.mxu1 %v3247_v47 }
 0x6e3   : > { %2962 = vmatmul.mubr.msk.f32.vlgmr.msra.gmra.mrb[20].mxu1 %vm497_vm0, %v3414_v36 }
 0x6e4   : > { %2973 = vmatprep.mubr.msk.f32.mxu1 %vm3246_vm3, %v3247_v47 }
 0x7a9   : > { %v1986_v53 = vpop.f32.mrb[16].mxu1 }
 0x7aa   : > { %v1987_v54 = vadd.f32 %v1986_v53, %v3523_v12  ;;  %v2937_v57 = vpop.f32.mrb[17].mxu1 }
 0x7ac   : > { %1990 = vst.msk [vmem:[#allocation2 + $0x5] sm:$0x1] %vm485_vm2, %v1987_v54 }
 0x7b2   : > { %v2163_v58 = vpop.f32.mrb[18].mxu1 }
 0x7b3   : > { %v2164_v28 = vadd.f32 %v2163_v58, %v3407_v30  ;;  %v2951_v60 = vpop.f32.mrb[19].mxu1 }
 0x7b5   : > { %vm2167_vm12 = vcmp.gt.f32.partialorder %v2164_v28, 0.0  ;;  %v2168_v7 = vmul.f32 0.01, %v2164_v28 }
 0x7b6   : > { %v2963_v61 = vpop.f32.mrb[20].mxu1 }
 0x7b7   : > { %v2338_v38 = vadd.f32 %v2963_v61, %v3398_v16  ;;  %v2332_v62 = vpop.f32.mrb[21].mxu1  ;;  %v2169_v36 = vsel %vm2167_vm12, %v2164_v28, %v2168_v7 }
 0x7b8   : > { %v2333_v63 = vadd.f32 %v2332_v62, %v3394_v14  ;;  %2953 = vmatpush3.msra.mxu0 %v2169_v36 }
 0x7b9   : > { %vm2342_vm13 = vcmp.gt.f32.partialorder %v2338_v38, 0.0  ;;  %v2344_v0 = vmul.f32 0.01, %v2338_v38  ;;  %2955 = vmatmul.mubr.msk.f32.vlgmr.msra.gmra.mrb[20].mxu0 %vm474_vm1, %v3503_v41  ;;  %3029 = vmatprep.subr.bf16.mxu0 %v3245_v46 }
 0x7ba   : > { %vm2341_vm14 = vcmp.gt.f32.partialorder %v2333_v63, 0.0  ;;  %v2343_v1 = vmul.f32 0.01, %v2333_v63  ;;  %2968 = vmatprep.mubr.msk.f32.mxu0 %vm3246_vm3, %v3247_v47 }
 0x7bb   : > { %v2346_v2 = vsel %vm2342_vm13, %v2338_v38, %v2344_v0 }
 0x7bc   : > { %v2345_v3 = vsel %vm2341_vm14, %v2333_v63, %v2343_v1 }
 0x7bd   : > { %v3030_v16 = vpack.c.bf16 %v2346_v2, %v2345_v3 }
 0x7bf   : > { %3031 = vmatpush3.bf16.msra.mxu0 %v3030_v16 }
 0x7c2   : > { %2969 = vmatmul.mubr.msk.f32.vlgmr.msra.gmra.mrb[22].mxu0 %vm497_vm0, %v3486_v59  ;;  %v2499_v59 = vshrl.u32 %v2498_v11, 7 }
 0x7c4   : > { %vm2505_vm0 = vcmp.eq.s32.totalorder %v2499_v59, %v2504_v17 }
 0x88c   : > { %v2236_v14 = vpop.f32.mrb[20].mxu0 }
 0x88d   : > { %v2237_v5 = vadd.f32 %v2236_v14, %v3523_v12  ;;  %v2956_v6 = vpop.f32.mrb[21].mxu0 }
 0x88f   : > { %2240 = vst.msk [vmem:[#allocation2 + $0x6] sm:$0x1] %vm485_vm2, %v2237_v5 }
 0x895   : > { %v2413_v46 = vpop.f32.mrb[22].mxu0 }
 0x896   : > { %v2414_v8 = vadd.f32 %v2413_v46, %v3407_v30  ;;  %v2970_v9 = vpop.f32.mrb[23].mxu0  ;;  %v2507_v30 = vsel %vm2505_vm0, 0.0, %v2506_v18 }
 0x897   : > { %v2508_v20 = vsel %vm474_vm1, %v2507_v30, 0.0 }
 0x898   : > { %vm2417_vm15 = vcmp.gt.f32.partialorder %v2414_v8, 0.0  ;;  %v2418_v47 = vmul.f32 0.01, %v2414_v8  ;;  %2509 = vadd.xlane.f32.xlu1 %v2508_v20 }
 0x89a   : > { %v2419_v10 = vsel %vm2417_vm15, %v2414_v8, %v2418_v47 }
 0x89b   : > { %2972 = vmatpush3.msra.mxu1 %v2419_v10 }
 0x89c   : > { %2974 = vmatmul.mubr.msk.f32.vlgmr.msra.gmra.mrb[22].mxu1 %vm474_vm1, %v3503_v41 }
 0x925   : > { %v2510_v31 = vpop.xlane.xlu1 %2509 }
 0x96f   : > { %v2486_v55 = vpop.f32.mrb[22].mxu1 }
 0x970   : > { %v2487_v56 = vadd.f32 %v2486_v55, %v3523_v12  ;;  %v2975_v21 = vpop.f32.mrb[23].mxu1 }
 0x972   : > { %2490 = vst.msk [vmem:[#allocation2 + $0x7] sm:$0x1] %vm485_vm2, %v2487_v56 }
 0x979   : > { %v2493_v41 = vld [vmem:[#allocation2] sm:$0xff] }
 0x97a   : > { %v2494_v22 = vmul.f32 0.5, %v2493_v41 }
 0x97c   : > { %3119 = vtanh.f32 %v2494_v22 }
 0x986   : > { %v3120_v23 = vpop.eup %3119 }
 0x987   : > { %v2496_v24 = vmul.f32 0.5, %v3120_v23 }
 0x989   : > { %v2497_v25 = vadd.f32 0.5, %v2496_v24 }
 0x98b   : > { %v2511_v26 = vmul.f32 %v2507_v30, %v2497_v25 }
 0x98d   : > { %v2512_v27 = vand.u32 2147483647, %v2511_v26 }
 0x98f   : > { %v2513_v15 = vsel %vm474_vm1, %v2512_v27, 0.0 }
 0x990   : > { %2514 = vadd.xlane.f32.xlu0 %v2513_v15 }
 0xa1d   : > { %v2515_v29 = vpop.xlane.xlu0 %2514 }
 0xa1e   : > { %v2516_v12 = vmax.f32 %v2515_v29, 1e-12 }
 0xa20   : > { %3121 = vrcp.f32 %v2516_v12 }
 0xa2a   : > { %v3122_v32 = vpop.eup %3121 }
 0xa2b   : > { %v2518_v33 = vmul.f32 %v3122_v32, %v2510_v31 }
 0xa2d   : > { %v2519_v19 = vmul.f32 %v2518_v33, %v2511_v26 }
 0xa2f   : > { %v2520_v34 = vadd.f32 1.0, %v2519_v19 }
 0xa31   : > { %v2521_v35 = vsel %vm2505_vm0, %v2520_v34, %v2519_v19 }
 0xa32   : > { %v2522_v37 = vadd.f32 1e-06, %v2521_v35 }
 0xa34   : > { %v2523_v4 = vsel %vm474_vm1, %v2522_v37, 0.0 }
 0xa35   : > { %2524 = vadd.xlane.f32.xlu0 %v2523_v4 }
 0xa36   : > { %3138 = shalt.err (!%p3135_p5)
}
 0xa37   : > { %s3139_s25 = scalar_lea.hbm %s3664_s14, 128  ;;  %s3143_s29 = scalar_lea.hbm %s3751_s10, 256 }
 0xa38   : > { %p3140_p6 = scmp.ne.s32.totalorder %s3664_s14, %s3139_s25  ;;  %p3144_p10 = scmp.lt.u32.totalorder %s3664_s14, %s3751_s10 }
 0xa39   : > { %p3145_p11 = scmp.lt.u32.totalorder %s3143_s29, %s3139_s25  ;;  %p3147_p13 = scmp.lt.u32.totalorder %s3139_s25, %s3664_s14 }
 0xa3a   : > { %p3141_p7 = pnand %p3140_p6, %p3348_p4 }
 0xa3b   : > { %p3146_p12 = por %p3145_p11, %p3144_p10 }
 0xa3c   : > { %p3142_p9 = pneg %p3141_p7 }
 0xa3d   : > { %p3148_p0 = por %p3147_p13, %p3146_p12 }
 0xa3f   : > { %p3149_p1 = pnand %p3148_p0, %p3142_p9 }
 0xa41   : > { %3152 = shalt.err (!%p3149_p1)
}
 0xa42   : > { %3033 = dma.vmem_to_hbm [thread:$0]  (%p3348_p4), %s2564_s13, 128, %s3664_s14, %s2535_s8  }
 0xa43   : > { %s3758_s0 = sshll.u32 %s3465_s21, 3  ;;  %s3759_s11 = sshll.u32 %s3227_s18, 7 }
 0xa44   : > { %s419_s28 = scalar_lea.vmem [#allocation5], %s3758_s0  ;;  %s3692_s29 = scalar_lea.hbm %s3750_s9, %s3759_s11 }
 0xa45   : > { %s2549_s30 = sshll.u32 %s419_s28, 4  ;;  %s2530_s14 = scalar_lea.sflag [#allocation6], %s3465_s21  ;;  %s3694_s30 = int_to_ptr.vmem [resolvable:$true] %s2549_s30 }
 0xa46   : > { %s3153_s13 = scalar_lea.vmem %s3694_s30, 128  ;;  %s3249_s8 = smov [#allocation5]  }
 0xa47   : > { %p3154_p2 = scmp.ne.s32.totalorder %s3694_s30, %s3153_s13  ;;  %s3157_s18 = sshll.u32 %s3249_s8, 4  ;;  %s3158_s18 = int_to_ptr.vmem [resolvable:$false] %s3157_s18 }
 0xa48   : > { %s3159_s23 = scalar_lea.vmem %s3158_s18, 256  ;;  %p3160_p6 = scmp.lt.s32.totalorder %s3694_s30, %s3158_s18 }
 0xa49   : > { %p3155_p3 = pnand %p3154_p2, %p3348_p4  ;;  %p3161_p7 = scmp.lt.s32.totalorder %s3159_s23, %s3153_s13 }
 0xa4b   : > { %p3156_p5 = pneg %p3155_p3  ;;  %p3162_p9 = por %p3161_p7, %p3160_p6 }
 0xa4d   : > { %p3163_p10 = pnand %p3162_p9, %p3156_p5 }
 0xac2   : > { %v2525_v39 = vpop.xlane.xlu0 %2524 }
 0xac3   : > { %3123 = vrcp.f32 %v2525_v39 }
 0xacd   : > { %v3124_v13 = vpop.eup %3123 }
 0xace   : > { %v2527_v40 = vmul.f32 %v3124_v13, %v2522_v37 }
 0xad0   : > { %2528 = vst.msk [vmem:[%s419_s28] sm:$0xff] %vm474_vm1, %v2527_v40 }
 0xad1   : > { %3166 = shalt.err (!%p3163_p10)
}
 0xad2   : > { %s3167_s21 = scalar_lea.hbm %s3692_s29, 128  ;;  %s3171_s11 = scalar_lea.hbm %s3750_s9, 256 }
 0xad3   : > { %p3168_p11 = scmp.ne.s32.totalorder %s3692_s29, %s3167_s21  ;;  %p3172_p0 = scmp.lt.u32.totalorder %s3692_s29, %s3750_s9 }
 0xad4   : > { %p3173_p1 = scmp.lt.u32.totalorder %s3171_s11, %s3167_s21  ;;  %p3175_p3 = scmp.lt.u32.totalorder %s3167_s21, %s3692_s29 }
 0xad5   : > { %p3169_p12 = pnand %p3168_p11, %p3348_p4 }
 0xad6   : > { %p3174_p2 = por %p3173_p1, %p3172_p0 }
 0xad7   : > { %p3170_p13 = pneg %p3169_p12 }
 0xad8   : > { %p3176_p5 = por %p3175_p3, %p3174_p2 }
 0xada   : > { %p3177_p6 = pnand %p3176_p5, %p3170_p13 }
 0xadc   : > { %3180 = shalt.err (!%p3177_p6)
}
 0xadd   : > { %3032 = dma.vmem_to_hbm [thread:$0]  (%p3348_p4), %s3694_s30, 128, %s3692_s29, %s2530_s14  }
 0xade PF: > { %p3043_p7 = scmp.ge.s32.totalorder %s3235_s20, 2  ;;  %s2575_s13 = sand.u32 1, %s3215_s15  }
 0xadf   : > { %s2576_s8 = scalar_lea.sflag [#allocation6], %s2575_s13 }
 0xae0   : > { %p3037_p9 = pnand %p3043_p7, %p3355_p8 }
 0xae2   : > { %3206 = dma.done.wait (!%p3037_p9), %s2576_s8, 128  }
 0xae3   : > { %3208 = vsyncadd (!%p3037_p9), %s2576_s8, 4294967168  ;;  %s2585_s18 = scalar_lea.sflag [#allocation8], %s2575_s13 }
 0xae4   : > { %3210 = dma.done.wait (!%p3037_p9), %s2585_s18, 128  }
 0xae5   : > { %3212 = vsyncadd (!%p3037_p9), %s2585_s18, 4294967168  ;;  %s28_s20 = sadd.s32 1, %s3235_s20   ;;  %s3760_s15 = smov %s3219_s16 }
 0xae6   : > { %p25_p10 = scmp.ge.s32.totalorder %s28_s20, 4   ;;  %s3761_s16 = smov %s3223_s17 }
 0xae7   : > { %s3762_s17 = smov %s3361_s27  ;;  %s3763_s18 = smov %s3231_s19 }
 0xae8   : > { %s3764_s19 = smov %s3766_s22  ;;  %27 = sbr.rel (!%p25_p10) target bundleno = 9 (0x9), region = 114 }
 0xaef   :  { %2590 = vsyncpa [#allocation6], 1 }
 0xaf0   :  { %2592 = vsyncpa [#allocation6 + $0x1], 1 }
 0xaf1   :  { %2593 = vsyncpa [#allocation8], 1 }
 0xaf2   :  { %2595 = vsyncpa [#allocation8 + $0x1], 1 }

</bundles_post_ra>
